<compile_context>
chip_gen: v6e
topology: v6e:2x2x1
jax: 0.10.0
libtpu: 0.0.40
codegen_flags: <defaults>
</compile_context>

<pallas_src>
import numpy as np
import jax
import jax.numpy as jnp
from jax.experimental import pallas as pl
from jax.experimental.pallas import tpu as pltpu

IOU_THRESH = 0.5
SCORE_THRESH = 0.25
SCALE = 640.0
LANES = 128
BLK = 8  # greedy-loop blocking factor (one sublane-aligned slab of mask rows)


def fused_convert_nms_kernel(nblk_ref,       # SMEM (1,) int32: ceil(count / 8)
                             slab_ref,       # (8, N) rows 0-3 cxcywh (sorted desc), row 4 conf
                             boxes_cm_ref,   # (N, 4) same sorted cxcywh, box-major
                             out_ref,        # (8, N) rows 0-3 xyxy, 4 conf, 5 keep flag
                             mask_ref):      # VMEM scratch (N, N): 0/1 suppress mask
    n = slab_ref.shape[1]

    # ---- box convert + scale, lane-dense (1, N) row ops --------------------------------
    slab = slab_ref[...]
    cx = slab[0:1, :] * SCALE
    cy = slab[1:2, :] * SCALE
    w = slab[2:3, :] * SCALE
    h = slab[3:4, :] * SCALE
    conf = slab[4:5, :]                                 # already normalized in XLA glue
    x1r = cx - 0.5 * w
    y1r = cy - 0.5 * h
    x2r = cx + 0.5 * w
    y2r = cy + 0.5 * h
    area_r = (x2r - x1r) * (y2r - y1r)                  # (1, N)

    # ---- column (box-major) forms from the (N, 4) copy ---------------------------------
    # TODO(synk): could derive these by an in-kernel (8,N)->(N,8) transpose and drop this
    # input; kept as a second tiny input because the transpose lowering is riskier and the
    # duplicate convert math is O(N).
    bc = boxes_cm_ref[...]
    cxc = bc[:, 0:1] * SCALE
    cyc = bc[:, 1:2] * SCALE
    wc = bc[:, 2:3] * SCALE
    hc = bc[:, 3:4] * SCALE
    x1c = cxc - 0.5 * wc
    y1c = cyc - 0.5 * hc
    x2c = cxc + 0.5 * wc
    y2c = cyc + 0.5 * hc
    area_c = (x2c - x1c) * (y2c - y1c)                  # (N, 1)

    # ---- pairwise suppress mask (N, N), no divide ---------------------------------------
    ix1 = jnp.maximum(x1c, x1r)
    iy1 = jnp.maximum(y1c, y1r)
    ix2 = jnp.minimum(x2c, x2r)
    iy2 = jnp.minimum(y2c, y2r)
    iw = jnp.maximum(ix2 - ix1, 0.0)
    ih = jnp.maximum(iy2 - iy1, 0.0)
    inter = iw * ih
    union = area_c + area_r - inter
    rows_i = jax.lax.broadcasted_iota(jnp.int32, (n, n), 0)
    cols_i = jax.lax.broadcasted_iota(jnp.int32, (n, n), 1)
    # inter > thr * union  ==  IoU > thr for union > 0 (decisions may differ from an exact
    # divide only when IoU rounds exactly onto 0.5); padded zero-area pairs give 0 > 0 = F.
    mask_ref[...] = ((inter > IOU_THRESH * union) & (cols_i > rows_i)).astype(jnp.float32)

    # ---- greedy NMS: keep vector carried in vregs, loop blocked by 8 --------------------
    col_ids = jax.lax.broadcasted_iota(jnp.int32, (1, n), 1)
    nblk = nblk_ref[0]                                  # dynamic trip count (prefix / 8)

    def body(blk, keep):
        base = pl.multiple_of(blk * BLK, BLK)
        rows = mask_ref[pl.ds(base, BLK), :]            # (8, N) slab of suppress-mask rows
        for j in range(BLK):                            # static unroll, static sublanes
            i = base + j
            # gate = keep[i]; final at this point because rows < i were already applied.
            # TODO(synk): a dynamic lane extract (roll+pick) would shorten the serial chain
            # further but has a riskier Mosaic lowering than the masked reduce.
            gate = jnp.sum(jnp.where(col_ids == i, keep, 0.0))
            keep = keep * (1.0 - gate * rows[j:j + 1, :])
        return keep

    keep = jax.lax.fori_loop(0, nblk, body, jnp.ones((1, n), jnp.float32))
    final = ((keep > 0.0) & (conf >= SCORE_THRESH)).astype(jnp.float32)

    # ---- assemble (8, N) in vregs, one full-width unmasked store ------------------------
    rid = jax.lax.broadcasted_iota(jnp.int32, (8, n), 0)

    def bc8(v):
        return jnp.broadcast_to(v, (8, n))

    out = jnp.where(rid == 0, bc8(x1r),
          jnp.where(rid == 1, bc8(y1r),
          jnp.where(rid == 2, bc8(x2r),
          jnp.where(rid == 3, bc8(y2r),
          jnp.where(rid == 4, bc8(conf),
          jnp.where(rid == 5, bc8(final), 0.0))))))
    out_ref[...] = out


@jax.jit
def rtdetr_postprocess_padded(raw):
    raw2d = raw[0].astype(jnp.float32)                  # squeeze(0) -> (N, C)
    n = raw2d.shape[0]
    n_pad = ((n + LANES - 1) // LANES) * LANES

    # glue: normalization + descending-score sort (torchvision.ops.nms candidate order).
    conf = raw2d[:, 4]
    conf_n = conf / jnp.max(conf)                       # person_conf / person_conf.max()
    order = jnp.argsort(-conf_n)
    boxes_s = raw2d[order][:, :4]                       # (N, 4) cxcywh, sorted desc by conf
    conf_s = conf_n[order]                              # (N,)

    # serial greedy loop only needs the conf >= 0.25 prefix; blocks of 8 rows.
    count = jnp.sum(conf_s >= SCORE_THRESH).astype(jnp.int32)
    nblk = ((count + BLK - 1) // BLK).reshape((1,))

    # pad to a lane-aligned N with zero boxes / conf 0 (below threshold -> filtered out)
    pad = n_pad - n
    boxes_p = jnp.pad(boxes_s, ((0, pad), (0, 0)))      # (n_pad, 4)
    conf_p = jnp.pad(conf_s, (0, pad))                  # (n_pad,)

    # channel-major (8, N) slab: rows 0-3 cxcywh, row 4 conf, rows 5-7 zero padding
    slab = jnp.concatenate(
        [boxes_p.T, conf_p[None, :], jnp.zeros((3, n_pad), jnp.float32)], axis=0)

    # NOTE: the (n_pad, n_pad) f32 scratch is 576 KiB at RT-DETR's n_pad=384 — far below the
    # default scoped-VMEM limit on v5e/v6e/v7x.  If N ever grows past ~2k, raise
    # vmem_limit_bytes or compute the suppress mask in 8-row blocks inside the loop.
    out = pl.pallas_call(
        fused_convert_nms_kernel,
        out_shape=jax.ShapeDtypeStruct((8, n_pad), jnp.float32),
        grid_spec=pltpu.PrefetchScalarGridSpec(
            num_scalar_prefetch=1,
            grid=(1,),
            in_specs=[pl.BlockSpec((8, n_pad), lambda i, nb: (0, 0)),
                      pl.BlockSpec((n_pad, 4), lambda i, nb: (0, 0))],
            out_specs=pl.BlockSpec((8, n_pad), lambda i, nb: (0, 0)),
            scratch_shapes=[pltpu.VMEM((n_pad, n_pad), jnp.float32)]),
        compiler_params=pltpu.CompilerParams(
            dimension_semantics=("arbitrary",)),
        # TODO(synk): if the real workload had batch > 1, add the batch axis as a leading
        # "parallel" grid dimension so both v7x TensorCores are used; the module squeezes
        # batch 1 so a single grid point is used here.
    )(nblk, slab, boxes_p)
    return out


def rtdetr_postprocess(raw):
    out = np.asarray(jax.block_until_ready(rtdetr_postprocess_padded(raw)))
    keep = out[5] > 0.5
    # host-side compaction: dynamic output length (kept rows in descending-score order,
    # scores >= 0.25), matching the PyTorch module.
    return out[0:5, keep].T


# ---------------- pure-numpy reference (mirrors the PyTorch module) ----------------
def _iou(a, b):
    ix1 = max(a[0], b[0]); iy1 = max(a[1], b[1])
    ix2 = min(a[2], b[2]); iy2 = min(a[3], b[3])
    iw = max(ix2 - ix1, 0.0); ih = max(iy2 - iy1, 0.0)
    inter = iw * ih
    area_a = (a[2] - a[0]) * (a[3] - a[1])
    area_b = (b[2] - b[0]) * (b[3] - b[1])
    return inter / (area_a + area_b - inter)


def reference(raw):
    raw2d = np.asarray(raw, dtype=np.float32)[0]
    cxcywh = raw2d[:, :4] * SCALE
    conf = raw2d[:, 4]
    conf = conf / conf.max()
    cx, cy, w, h = cxcywh[:, 0], cxcywh[:, 1], cxcywh[:, 2], cxcywh[:, 3]
    xyxy = np.stack([cx - w / 2, cy - h / 2, cx + w / 2, cy + h / 2], axis=1)
    order = np.argsort(-conf)
    suppressed = np.zeros(len(order), bool)
    kept = []
    for a in range(len(order)):
        if suppressed[a]:
            continue
        i = order[a]
        kept.append(i)
        for b in range(a + 1, len(order)):
            if suppressed[b]:
                continue
            if _iou(xyxy[i], xyxy[order[b]]) > IOU_THRESH:
                suppressed[b] = True
    kept = np.array(kept, dtype=np.int64)
    bs = np.concatenate([xyxy[kept], conf[kept][:, None]], axis=1)
    return bs[bs[:, 4] >= SCORE_THRESH]


if __name__ == "__main__":
    key = jax.random.PRNGKey(0)
    N, C = 64, 8                       # small synthetic RT-DETR head output
    raw = jax.random.uniform(key, (1, N, C), dtype=jnp.float32)

    result = rtdetr_postprocess(raw)   # blocks internally via block_until_ready
    ref = reference(raw)

    assert result.shape == ref.shape, (result.shape, ref.shape)
    assert np.allclose(result, ref, rtol=1e-5, atol=1e-4), "mismatch vs reference"
    print("KERNEL_OK")
</pallas_src>

<mosaic_0001>
module attributes {stable_mosaic.version = 11 : i64} {
  func.func @fused_convert_nms_kernel(%arg0: i32, %arg1: memref<1xi32, #tpu.memory_space<smem>>, %arg2: memref<8x128xf32, #tpu.memory_space<vmem>>, %arg3: memref<128x4xf32, #tpu.memory_space<vmem>>, %arg4: memref<8x128xf32, #tpu.memory_space<vmem>>, %arg5: memref<128x128xf32, #tpu.memory_space<vmem>>) attributes {dimension_semantics = [#tpu.dimension_semantics<arbitrary>], iteration_bounds = array<i64: 1>, scalar_prefetch = 1 : i64, scratch_operands = 1 : i64, tpu.core_type = #tpu.core_type<tc>, window_params = [{pipeline_mode = #tpu.pipeline_mode<synchronous>, transform_indices = @transform_0, window_bounds = array<i64: 8, 128>}, {pipeline_mode = #tpu.pipeline_mode<synchronous>, transform_indices = @transform_1, window_bounds = array<i64: 128, 4>}, {pipeline_mode = #tpu.pipeline_mode<synchronous>, transform_indices = @transform_2, window_bounds = array<i64: 8, 128>}]} {
    %c0 = arith.constant 0 : index
    %c0_0 = arith.constant 0 : index
    %0 = vector.load %arg2[%c0, %c0_0] : memref<8x128xf32, #tpu.memory_space<vmem>>, vector<8x128xf32>
    %1 = vector.extract_strided_slice %0 {offsets = [0, 0], sizes = [1, 128], strides = [1, 1]} : vector<8x128xf32> to vector<1x128xf32>
    %cst = arith.constant 6.400000e+02 : f32
    %2 = vector.broadcast %cst : f32 to vector<1x128xf32>
    %3 = arith.mulf %1, %2 : vector<1x128xf32>
    %4 = vector.extract_strided_slice %0 {offsets = [1, 0], sizes = [1, 128], strides = [1, 1]} : vector<8x128xf32> to vector<1x128xf32>
    %cst_1 = arith.constant 6.400000e+02 : f32
    %5 = vector.broadcast %cst_1 : f32 to vector<1x128xf32>
    %6 = arith.mulf %4, %5 : vector<1x128xf32>
    %7 = vector.extract_strided_slice %0 {offsets = [2, 0], sizes = [1, 128], strides = [1, 1]} : vector<8x128xf32> to vector<1x128xf32>
    %cst_2 = arith.constant 6.400000e+02 : f32
    %8 = vector.broadcast %cst_2 : f32 to vector<1x128xf32>
    %9 = arith.mulf %7, %8 : vector<1x128xf32>
    %10 = vector.extract_strided_slice %0 {offsets = [3, 0], sizes = [1, 128], strides = [1, 1]} : vector<8x128xf32> to vector<1x128xf32>
    %cst_3 = arith.constant 6.400000e+02 : f32
    %11 = vector.broadcast %cst_3 : f32 to vector<1x128xf32>
    %12 = arith.mulf %10, %11 : vector<1x128xf32>
    %13 = vector.extract_strided_slice %0 {offsets = [4, 0], sizes = [1, 128], strides = [1, 1]} : vector<8x128xf32> to vector<1x128xf32>
    %cst_4 = arith.constant 5.000000e-01 : f32
    %14 = vector.broadcast %cst_4 : f32 to vector<1x128xf32>
    %15 = arith.mulf %14, %9 : vector<1x128xf32>
    %16 = arith.subf %3, %15 : vector<1x128xf32>
    %cst_5 = arith.constant 5.000000e-01 : f32
    %17 = vector.broadcast %cst_5 : f32 to vector<1x128xf32>
    %18 = arith.mulf %17, %12 : vector<1x128xf32>
    %19 = arith.subf %6, %18 : vector<1x128xf32>
    %cst_6 = arith.constant 5.000000e-01 : f32
    %20 = vector.broadcast %cst_6 : f32 to vector<1x128xf32>
    %21 = arith.mulf %20, %9 : vector<1x128xf32>
    %22 = arith.addf %3, %21 : vector<1x128xf32>
    %cst_7 = arith.constant 5.000000e-01 : f32
    %23 = vector.broadcast %cst_7 : f32 to vector<1x128xf32>
    %24 = arith.mulf %23, %12 : vector<1x128xf32>
    %25 = arith.addf %6, %24 : vector<1x128xf32>
    %26 = arith.subf %22, %16 : vector<1x128xf32>
    %27 = arith.subf %25, %19 : vector<1x128xf32>
    %28 = arith.mulf %26, %27 : vector<1x128xf32>
    %c0_8 = arith.constant 0 : index
    %c0_9 = arith.constant 0 : index
    %29 = vector.load %arg3[%c0_8, %c0_9] : memref<128x4xf32, #tpu.memory_space<vmem>>, vector<128x4xf32>
    %30 = vector.extract_strided_slice %29 {offsets = [0, 0], sizes = [128, 1], strides = [1, 1]} : vector<128x4xf32> to vector<128x1xf32>
    %cst_10 = arith.constant 6.400000e+02 : f32
    %31 = vector.broadcast %cst_10 : f32 to vector<128x1xf32>
    %32 = arith.mulf %30, %31 : vector<128x1xf32>
    %33 = vector.extract_strided_slice %29 {offsets = [0, 1], sizes = [128, 1], strides = [1, 1]} : vector<128x4xf32> to vector<128x1xf32>
    %cst_11 = arith.constant 6.400000e+02 : f32
    %34 = vector.broadcast %cst_11 : f32 to vector<128x1xf32>
    %35 = arith.mulf %33, %34 : vector<128x1xf32>
    %36 = vector.extract_strided_slice %29 {offsets = [0, 2], sizes = [128, 1], strides = [1, 1]} : vector<128x4xf32> to vector<128x1xf32>
    %cst_12 = arith.constant 6.400000e+02 : f32
    %37 = vector.broadcast %cst_12 : f32 to vector<128x1xf32>
    %38 = arith.mulf %36, %37 : vector<128x1xf32>
    %39 = vector.extract_strided_slice %29 {offsets = [0, 3], sizes = [128, 1], strides = [1, 1]} : vector<128x4xf32> to vector<128x1xf32>
    %cst_13 = arith.constant 6.400000e+02 : f32
    %40 = vector.broadcast %cst_13 : f32 to vector<128x1xf32>
    %41 = arith.mulf %39, %40 : vector<128x1xf32>
    %cst_14 = arith.constant 5.000000e-01 : f32
    %42 = vector.broadcast %cst_14 : f32 to vector<128x1xf32>
    %43 = arith.mulf %42, %38 : vector<128x1xf32>
    %44 = arith.subf %32, %43 : vector<128x1xf32>
    %cst_15 = arith.constant 5.000000e-01 : f32
    %45 = vector.broadcast %cst_15 : f32 to vector<128x1xf32>
    %46 = arith.mulf %45, %41 : vector<128x1xf32>
    %47 = arith.subf %35, %46 : vector<128x1xf32>
    %cst_16 = arith.constant 5.000000e-01 : f32
    %48 = vector.broadcast %cst_16 : f32 to vector<128x1xf32>
    %49 = arith.mulf %48, %38 : vector<128x1xf32>
    %50 = arith.addf %32, %49 : vector<128x1xf32>
    %cst_17 = arith.constant 5.000000e-01 : f32
    %51 = vector.broadcast %cst_17 : f32 to vector<128x1xf32>
    %52 = arith.mulf %51, %41 : vector<128x1xf32>
    %53 = arith.addf %35, %52 : vector<128x1xf32>
    %54 = arith.subf %50, %44 : vector<128x1xf32>
    %55 = arith.subf %53, %47 : vector<128x1xf32>
    %56 = arith.mulf %54, %55 : vector<128x1xf32>
    %57 = vector.broadcast %44 : vector<128x1xf32> to vector<128x128xf32>
    %58 = vector.broadcast %16 : vector<1x128xf32> to vector<128x128xf32>
    %59 = arith.maximumf %57, %58 : vector<128x128xf32>
    %60 = vector.broadcast %47 : vector<128x1xf32> to vector<128x128xf32>
    %61 = vector.broadcast %19 : vector<1x128xf32> to vector<128x128xf32>
    %62 = arith.maximumf %60, %61 : vector<128x128xf32>
    %63 = vector.broadcast %50 : vector<128x1xf32> to vector<128x128xf32>
    %64 = vector.broadcast %22 : vector<1x128xf32> to vector<128x128xf32>
    %65 = arith.minimumf %63, %64 : vector<128x128xf32>
    %66 = vector.broadcast %53 : vector<128x1xf32> to vector<128x128xf32>
    %67 = vector.broadcast %25 : vector<1x128xf32> to vector<128x128xf32>
    %68 = arith.minimumf %66, %67 : vector<128x128xf32>
    %69 = arith.subf %65, %59 : vector<128x128xf32>
    %cst_18 = arith.constant 0.000000e+00 : f32
    %70 = vector.broadcast %cst_18 : f32 to vector<128x128xf32>
    %71 = arith.maximumf %69, %70 : vector<128x128xf32>
    %72 = arith.subf %68, %62 : vector<128x128xf32>
    %cst_19 = arith.constant 0.000000e+00 : f32
    %73 = vector.broadcast %cst_19 : f32 to vector<128x128xf32>
    %74 = arith.maximumf %72, %73 : vector<128x128xf32>
    %75 = arith.mulf %71, %74 : vector<128x128xf32>
    %76 = vector.broadcast %56 : vector<128x1xf32> to vector<128x128xf32>
    %77 = vector.broadcast %28 : vector<1x128xf32> to vector<128x128xf32>
    %78 = arith.addf %76, %77 : vector<128x128xf32>
    %79 = arith.subf %78, %75 : vector<128x128xf32>
    %80 = tpu.iota {dimensions = array<i32: 0>} : vector<128x128xi32>
    %81 = tpu.iota {dimensions = array<i32: 1>} : vector<128x128xi32>
    %cst_20 = arith.constant 5.000000e-01 : f32
    %82 = vector.broadcast %cst_20 : f32 to vector<128x128xf32>
    %83 = arith.mulf %82, %79 : vector<128x128xf32>
    %84 = arith.cmpf ogt, %75, %83 : vector<128x128xf32>
    %85 = arith.cmpi sgt, %81, %80 : vector<128x128xi32>
    %86 = arith.andi %84, %85 : vector<128x128xi1>
    %87 = arith.extui %86 : vector<128x128xi1> to vector<128x128xi32>
    %88 = arith.sitofp %87 : vector<128x128xi32> to vector<128x128xf32>
    %c0_21 = arith.constant 0 : index
    %c0_22 = arith.constant 0 : index
    %89 = vector.load %arg5[%c0_21, %c0_22] : memref<128x128xf32, #tpu.memory_space<vmem>>, vector<128x128xf32>
    tpu.vector_store %arg5[%c0_21, %c0_22], %88 {strides = array<i32>} : memref<128x128xf32, #tpu.memory_space<vmem>>, vector<128x128xf32>,
    %90 = tpu.iota {dimensions = array<i32: 1>} : vector<1x128xi32>
    %c0_23 = arith.constant 0 : index
    %91 = memref.load %arg1[%c0_23] : memref<1xi32, #tpu.memory_space<smem>>
    %cst_24 = arith.constant 1.000000e+00 : f32
    %92 = vector.broadcast %cst_24 : f32 to vector<1x128xf32>
    %c0_i32 = arith.constant 0 : i32
    %93 = arith.subi %91, %c0_i32 : i32
    %94 = arith.addi %c0_i32, %93 : i32
    %c1_i32 = arith.constant 1 : i32
    %95 = scf.for %arg6 = %c0_i32 to %94 step %c1_i32 iter_args(%arg7 = %92) -> (vector<1x128xf32>)  : i32 {
      %c8_i32 = arith.constant 8 : i32
      %136 = arith.muli %arg6, %c8_i32 : i32
      %137 = tpu.assume_multiple %136, 8 : i32
      %138 = arith.index_cast %137 : i32 to index
      %c0_32 = arith.constant 0 : index
      %139 = vector.load %arg5[%138, %c0_32] : memref<128x128xf32, #tpu.memory_space<vmem>>, vector<8x128xf32>
      %c0_i32_33 = arith.constant 0 : i32
      %140 = arith.addi %137, %c0_i32_33 : i32
      %141 = vector.broadcast %140 : i32 to vector<1x128xi32>
      %142 = arith.cmpi eq, %90, %141 : vector<1x128xi32>
      %cst_34 = arith.constant 0.000000e+00 : f32
      %143 = vector.broadcast %cst_34 : f32 to vector<1x128xf32>
      %144 = arith.select %142, %arg7, %143 : vector<1x128xi1>, vector<1x128xf32>
      %145 = vector.shape_cast %144 : vector<1x128xf32> to vector<1x1x128xf32>
      %cst_35 = arith.constant dense<0.000000e+00> : vector<1xf32>
      %146 = vector.multi_reduction <add>, %145, %cst_35 [1, 2] : vector<1x1x128xf32> to vector<1xf32>
      %147 = vector.shape_cast %146 : vector<1xf32> to vector<1x1x1xf32>
      %148 = vector.extract %147[0, 0, 0] : f32 from vector<1x1x1xf32>
      %149 = vector.extract_strided_slice %139 {offsets = [0, 0], sizes = [1, 128], strides = [1, 1]} : vector<8x128xf32> to vector<1x128xf32>
      %150 = vector.broadcast %148 : f32 to vector<1x128xf32>
      %151 = arith.mulf %150, %149 : vector<1x128xf32>
      %cst_36 = arith.constant 1.000000e+00 : f32
      %152 = vector.broadcast %cst_36 : f32 to vector<1x128xf32>
      %153 = arith.subf %152, %151 : vector<1x128xf32>
      %154 = arith.mulf %arg7, %153 : vector<1x128xf32>
      %c1_i32_37 = arith.constant 1 : i32
      %155 = arith.addi %137, %c1_i32_37 : i32
      %156 = vector.broadcast %155 : i32 to vector<1x128xi32>
      %157 = arith.cmpi eq, %90, %156 : vector<1x128xi32>
      %cst_38 = arith.constant 0.000000e+00 : f32
      %158 = vector.broadcast %cst_38 : f32 to vector<1x128xf32>
      %159 = arith.select %157, %154, %158 : vector<1x128xi1>, vector<1x128xf32>
      %160 = vector.shape_cast %159 : vector<1x128xf32> to vector<1x1x128xf32>
      %cst_39 = arith.constant dense<0.000000e+00> : vector<1xf32>
      %161 = vector.multi_reduction <add>, %160, %cst_39 [1, 2] : vector<1x1x128xf32> to vector<1xf32>
      %162 = vector.shape_cast %161 : vector<1xf32> to vector<1x1x1xf32>
      %163 = vector.extract %162[0, 0, 0] : f32 from vector<1x1x1xf32>
      %164 = vector.extract_strided_slice %139 {offsets = [1, 0], sizes = [1, 128], strides = [1, 1]} : vector<8x128xf32> to vector<1x128xf32>
      %165 = vector.broadcast %163 : f32 to vector<1x128xf32>
      %166 = arith.mulf %165, %164 : vector<1x128xf32>
      %cst_40 = arith.constant 1.000000e+00 : f32
      %167 = vector.broadcast %cst_40 : f32 to vector<1x128xf32>
      %168 = arith.subf %167, %166 : vector<1x128xf32>
      %169 = arith.mulf %154, %168 : vector<1x128xf32>
      %c2_i32_41 = arith.constant 2 : i32
      %170 = arith.addi %137, %c2_i32_41 : i32
      %171 = vector.broadcast %170 : i32 to vector<1x128xi32>
      %172 = arith.cmpi eq, %90, %171 : vector<1x128xi32>
      %cst_42 = arith.constant 0.000000e+00 : f32
      %173 = vector.broadcast %cst_42 : f32 to vector<1x128xf32>
      %174 = arith.select %172, %169, %173 : vector<1x128xi1>, vector<1x128xf32>
      %175 = vector.shape_cast %174 : vector<1x128xf32> to vector<1x1x128xf32>
      %cst_43 = arith.constant dense<0.000000e+00> : vector<1xf32>
      %176 = vector.multi_reduction <add>, %175, %cst_43 [1, 2] : vector<1x1x128xf32> to vector<1xf32>
      %177 = vector.shape_cast %176 : vector<1xf32> to vector<1x1x1xf32>
      %178 = vector.extract %177[0, 0, 0] : f32 from vector<1x1x1xf32>
      %179 = vector.extract_strided_slice %139 {offsets = [2, 0], sizes = [1, 128], strides = [1, 1]} : vector<8x128xf32> to vector<1x128xf32>
      %180 = vector.broadcast %178 : f32 to vector<1x128xf32>
      %181 = arith.mulf %180, %179 : vector<1x128xf32>
      %cst_44 = arith.constant 1.000000e+00 : f32
      %182 = vector.broadcast %cst_44 : f32 to vector<1x128xf32>
      %183 = arith.subf %182, %181 : vector<1x128xf32>
      %184 = arith.mulf %169, %183 : vector<1x128xf32>
      %c3_i32_45 = arith.constant 3 : i32
      %185 = arith.addi %137, %c3_i32_45 : i32
      %186 = vector.broadcast %185 : i32 to vector<1x128xi32>
      %187 = arith.cmpi eq, %90, %186 : vector<1x128xi32>
      %cst_46 = arith.constant 0.000000e+00 : f32
      %188 = vector.broadcast %cst_46 : f32 to vector<1x128xf32>
      %189 = arith.select %187, %184, %188 : vector<1x128xi1>, vector<1x128xf32>
      %190 = vector.shape_cast %189 : vector<1x128xf32> to vector<1x1x128xf32>
      %cst_47 = arith.constant dense<0.000000e+00> : vector<1xf32>
      %191 = vector.multi_reduction <add>, %190, %cst_47 [1, 2] : vector<1x1x128xf32> to vector<1xf32>
      %192 = vector.shape_cast %191 : vector<1xf32> to vector<1x1x1xf32>
      %193 = vector.extract %192[0, 0, 0] : f32 from vector<1x1x1xf32>
      %194 = vector.extract_strided_slice %139 {offsets = [3, 0], sizes = [1, 128], strides = [1, 1]} : vector<8x128xf32> to vector<1x128xf32>
      %195 = vector.broadcast %193 : f32 to vector<1x128xf32>
      %196 = arith.mulf %195, %194 : vector<1x128xf32>
      %cst_48 = arith.constant 1.000000e+00 : f32
      %197 = vector.broadcast %cst_48 : f32 to vector<1x128xf32>
      %198 = arith.subf %197, %196 : vector<1x128xf32>
      %199 = arith.mulf %184, %198 : vector<1x128xf32>
      %c4_i32_49 = arith.constant 4 : i32
      %200 = arith.addi %137, %c4_i32_49 : i32
      %201 = vector.broadcast %200 : i32 to vector<1x128xi32>
      %202 = arith.cmpi eq, %90, %201 : vector<1x128xi32>
      %cst_50 = arith.constant 0.000000e+00 : f32
      %203 = vector.broadcast %cst_50 : f32 to vector<1x128xf32>
      %204 = arith.select %202, %199, %203 : vector<1x128xi1>, vector<1x128xf32>
      %205 = vector.shape_cast %204 : vector<1x128xf32> to vector<1x1x128xf32>
      %cst_51 = arith.constant dense<0.000000e+00> : vector<1xf32>
      %206 = vector.multi_reduction <add>, %205, %cst_51 [1, 2] : vector<1x1x128xf32> to vector<1xf32>
      %207 = vector.shape_cast %206 : vector<1xf32> to vector<1x1x1xf32>
      %208 = vector.extract %207[0, 0, 0] : f32 from vector<1x1x1xf32>
      %209 = vector.extract_strided_slice %139 {offsets = [4, 0], sizes = [1, 128], strides = [1, 1]} : vector<8x128xf32> to vector<1x128xf32>
      %210 = vector.broadcast %208 : f32 to vector<1x128xf32>
      %211 = arith.mulf %210, %209 : vector<1x128xf32>
      %cst_52 = arith.constant 1.000000e+00 : f32
      %212 = vector.broadcast %cst_52 : f32 to vector<1x128xf32>
      %213 = arith.subf %212, %211 : vector<1x128xf32>
      %214 = arith.mulf %199, %213 : vector<1x128xf32>
      %c5_i32_53 = arith.constant 5 : i32
      %215 = arith.addi %137, %c5_i32_53 : i32
      %216 = vector.broadcast %215 : i32 to vector<1x128xi32>
      %217 = arith.cmpi eq, %90, %216 : vector<1x128xi32>
      %cst_54 = arith.constant 0.000000e+00 : f32
      %218 = vector.broadcast %cst_54 : f32 to vector<1x128xf32>
      %219 = arith.select %217, %214, %218 : vector<1x128xi1>, vector<1x128xf32>
      %220 = vector.shape_cast %219 : vector<1x128xf32> to vector<1x1x128xf32>
      %cst_55 = arith.constant dense<0.000000e+00> : vector<1xf32>
      %221 = vector.multi_reduction <add>, %220, %cst_55 [1, 2] : vector<1x1x128xf32> to vector<1xf32>
      %222 = vector.shape_cast %221 : vector<1xf32> to vector<1x1x1xf32>
      %223 = vector.extract %222[0, 0, 0] : f32 from vector<1x1x1xf32>
      %224 = vector.extract_strided_slice %139 {offsets = [5, 0], sizes = [1, 128], strides = [1, 1]} : vector<8x128xf32> to vector<1x128xf32>
      %225 = vector.broadcast %223 : f32 to vector<1x128xf32>
      %226 = arith.mulf %225, %224 : vector<1x128xf32>
      %cst_56 = arith.constant 1.000000e+00 : f32
      %227 = vector.broadcast %cst_56 : f32 to vector<1x128xf32>
      %228 = arith.subf %227, %226 : vector<1x128xf32>
      %229 = arith.mulf %214, %228 : vector<1x128xf32>
      %c6_i32 = arith.constant 6 : i32
      %230 = arith.addi %137, %c6_i32 : i32
      %231 = vector.broadcast %230 : i32 to vector<1x128xi32>
      %232 = arith.cmpi eq, %90, %231 : vector<1x128xi32>
      %cst_57 = arith.constant 0.000000e+00 : f32
      %233 = vector.broadcast %cst_57 : f32 to vector<1x128xf32>
      %234 = arith.select %232, %229, %233 : vector<1x128xi1>, vector<1x128xf32>
      %235 = vector.shape_cast %234 : vector<1x128xf32> to vector<1x1x128xf32>
      %cst_58 = arith.constant dense<0.000000e+00> : vector<1xf32>
      %236 = vector.multi_reduction <add>, %235, %cst_58 [1, 2] : vector<1x1x128xf32> to vector<1xf32>
      %237 = vector.shape_cast %236 : vector<1xf32> to vector<1x1x1xf32>
      %238 = vector.extract %237[0, 0, 0] : f32 from vector<1x1x1xf32>
      %239 = vector.extract_strided_slice %139 {offsets = [6, 0], sizes = [1, 128], strides = [1, 1]} : vector<8x128xf32> to vector<1x128xf32>
      %240 = vector.broadcast %238 : f32 to vector<1x128xf32>
      %241 = arith.mulf %240, %239 : vector<1x128xf32>
      %cst_59 = arith.constant 1.000000e+00 : f32
      %242 = vector.broadcast %cst_59 : f32 to vector<1x128xf32>
      %243 = arith.subf %242, %241 : vector<1x128xf32>
      %244 = arith.mulf %229, %243 : vector<1x128xf32>
      %c7_i32 = arith.constant 7 : i32
      %245 = arith.addi %137, %c7_i32 : i32
      %246 = vector.broadcast %245 : i32 to vector<1x128xi32>
      %247 = arith.cmpi eq, %90, %246 : vector<1x128xi32>
      %cst_60 = arith.constant 0.000000e+00 : f32
      %248 = vector.broadcast %cst_60 : f32 to vector<1x128xf32>
      %249 = arith.select %247, %244, %248 : vector<1x128xi1>, vector<1x128xf32>
      %250 = vector.shape_cast %249 : vector<1x128xf32> to vector<1x1x128xf32>
      %cst_61 = arith.constant dense<0.000000e+00> : vector<1xf32>
      %251 = vector.multi_reduction <add>, %250, %cst_61 [1, 2] : vector<1x1x128xf32> to vector<1xf32>
      %252 = vector.shape_cast %251 : vector<1xf32> to vector<1x1x1xf32>
      %253 = vector.extract %252[0, 0, 0] : f32 from vector<1x1x1xf32>
      %254 = vector.extract_strided_slice %139 {offsets = [7, 0], sizes = [1, 128], strides = [1, 1]} : vector<8x128xf32> to vector<1x128xf32>
      %255 = vector.broadcast %253 : f32 to vector<1x128xf32>
      %256 = arith.mulf %255, %254 : vector<1x128xf32>
      %cst_62 = arith.constant 1.000000e+00 : f32
      %257 = vector.broadcast %cst_62 : f32 to vector<1x128xf32>
      %258 = arith.subf %257, %256 : vector<1x128xf32>
      %259 = arith.mulf %244, %258 : vector<1x128xf32>
      scf.yield %259 : vector<1x128xf32>
    }
    %cst_25 = arith.constant 0.000000e+00 : f32
    %96 = vector.broadcast %cst_25 : f32 to vector<1x128xf32>
    %97 = arith.cmpf ogt, %95, %96 : vector<1x128xf32>
    %cst_26 = arith.constant 2.500000e-01 : f32
    %98 = vector.broadcast %cst_26 : f32 to vector<1x128xf32>
    %99 = arith.cmpf oge, %13, %98 : vector<1x128xf32>
    %100 = arith.andi %97, %99 : vector<1x128xi1>
    %101 = arith.extui %100 : vector<1x128xi1> to vector<1x128xi32>
    %102 = arith.sitofp %101 : vector<1x128xi32> to vector<1x128xf32>
    %103 = tpu.iota {dimensions = array<i32: 0>} : vector<8x128xi32>
    %c0_i32_27 = arith.constant 0 : i32
    %104 = vector.broadcast %c0_i32_27 : i32 to vector<8x128xi32>
    %105 = arith.cmpi eq, %103, %104 : vector<8x128xi32>
    %106 = vector.shape_cast %16 : vector<1x128xf32> to vector<1x128xf32>
    %107 = vector.broadcast %106 : vector<1x128xf32> to vector<8x128xf32>
    %c1_i32_28 = arith.constant 1 : i32
    %108 = vector.broadcast %c1_i32_28 : i32 to vector<8x128xi32>
    %109 = arith.cmpi eq, %103, %108 : vector<8x128xi32>
    %110 = vector.shape_cast %19 : vector<1x128xf32> to vector<1x128xf32>
    %111 = vector.broadcast %110 : vector<1x128xf32> to vector<8x128xf32>
    %c2_i32 = arith.constant 2 : i32
    %112 = vector.broadcast %c2_i32 : i32 to vector<8x128xi32>
    %113 = arith.cmpi eq, %103, %112 : vector<8x128xi32>
    %114 = vector.shape_cast %22 : vector<1x128xf32> to vector<1x128xf32>
    %115 = vector.broadcast %114 : vector<1x128xf32> to vector<8x128xf32>
    %c3_i32 = arith.constant 3 : i32
    %116 = vector.broadcast %c3_i32 : i32 to vector<8x128xi32>
    %117 = arith.cmpi eq, %103, %116 : vector<8x128xi32>
    %118 = vector.shape_cast %25 : vector<1x128xf32> to vector<1x128xf32>
    %119 = vector.broadcast %118 : vector<1x128xf32> to vector<8x128xf32>
    %c4_i32 = arith.constant 4 : i32
    %120 = vector.broadcast %c4_i32 : i32 to vector<8x128xi32>
    %121 = arith.cmpi eq, %103, %120 : vector<8x128xi32>
    %122 = vector.shape_cast %13 : vector<1x128xf32> to vector<1x128xf32>
    %123 = vector.broadcast %122 : vector<1x128xf32> to vector<8x128xf32>
    %c5_i32 = arith.constant 5 : i32
    %124 = vector.broadcast %c5_i32 : i32 to vector<8x128xi32>
    %125 = arith.cmpi eq, %103, %124 : vector<8x128xi32>
    %126 = vector.shape_cast %102 : vector<1x128xf32> to vector<1x128xf32>
    %127 = vector.broadcast %126 : vector<1x128xf32> to vector<8x128xf32>
    %cst_29 = arith.constant 0.000000e+00 : f32
    %128 = vector.broadcast %cst_29 : f32 to vector<8x128xf32>
    %129 = arith.select %125, %127, %128 : vector<8x128xi1>, vector<8x128xf32>
    %130 = arith.select %121, %123, %129 : vector<8x128xi1>, vector<8x128xf32>
    %131 = arith.select %117, %119, %130 : vector<8x128xi1>, vector<8x128xf32>
    %132 = arith.select %113, %115, %131 : vector<8x128xi1>, vector<8x128xf32>
    %133 = arith.select %109, %111, %132 : vector<8x128xi1>, vector<8x128xf32>
    %134 = arith.select %105, %107, %133 : vector<8x128xi1>, vector<8x128xf32>
    %c0_30 = arith.constant 0 : index
    %c0_31 = arith.constant 0 : index
    %135 = vector.load %arg4[%c0_30, %c0_31] : memref<8x128xf32, #tpu.memory_space<vmem>>, vector<8x128xf32>
    tpu.vector_store %arg4[%c0_30, %c0_31], %134 {strides = array<i32>} : memref<8x128xf32, #tpu.memory_space<vmem>>, vector<8x128xf32>,
    return
  }
  func.func @transform_0(%arg0: i32, %arg1: memref<1xi32, #tpu.memory_space<smem>>) -> (i32, i32) {
    %c0_i32 = arith.constant 0 : i32
    %c0_i32_0 = arith.constant 0 : i32
    %c0_i32_1 = arith.constant 0 : i32
    return %c0_i32, %c0_i32_0 : i32, i32
  }
  func.func @transform_1(%arg0: i32, %arg1: memref<1xi32, #tpu.memory_space<smem>>) -> (i32, i32) {
    %c0_i32 = arith.constant 0 : i32
    %c0_i32_0 = arith.constant 0 : i32
    %c0_i32_1 = arith.constant 0 : i32
    return %c0_i32, %c0_i32_0 : i32, i32
  }
  func.func @transform_2(%arg0: i32, %arg1: memref<1xi32, #tpu.memory_space<smem>>) -> (i32, i32) {
    %c0_i32 = arith.constant 0 : i32
    %c0_i32_0 = arith.constant 0 : i32
    %c0_i32_1 = arith.constant 0 : i32
    return %c0_i32, %c0_i32_0 : i32, i32
  }
}

</mosaic_0001>

<bundles_post_ra>
// kernel: neg.1
= control target key start
LH: loop header
LB: loop body
LE: loop exit
PB: predicated region body
PF: predicated region fallthrough
CT: control target
= control target key end

     0   :  { %s24_s0 = inlined_call_operand.vmem [shape: f32[64], index: 0, kind: input, shape index: {}]   ;;  %s25_s1 = inlined_call_operand.vmem [shape: f32[64], index: 1, kind: output, shape index: {}]  }
   0x1   :  { %v2_v0 = vld [vmem:[%s24_s0] sm:$0x1] }
   0x2   :  { %v5_v1 = vxor.u32 2147483648, %v2_v0 }
   0x4   :  { %7 = vst [vmem:[%s25_s1] sm:$0x1] %v5_v1 }

// kernel: rtdetr_postprocess_padded.1
= control target key start
LH: loop header
LB: loop body
LE: loop exit
PB: predicated region body
PF: predicated region fallthrough
CT: control target
= control target key end

     0   :  { %v1309_v6 = vmov 1   ;;  %v2128_v7 = vmov 0   ;;  %s1311_s24 = smov 126   ;;  %s2124_s0 = inlined_call_operand.<no memory space> [shape: s32[1], index: 0, kind: input, shape index: {}]   ;;  %s2125_s1 = inlined_call_operand.vmem [shape: f32[8,128], index: 1, kind: input, shape index: {}]   ;;  %s2126_s2 = inlined_call_operand.vmem [shape: f32[128,4], index: 2, kind: input, shape index: {}]   ;;  %s2127_s3 = inlined_call_operand.hbm [shape: f32[8,128], index: 3, kind: output, shape index: {}]  }
   0x1   :  { %v27_v0 = vld [vmem:[%s2126_s2] sm:$0xff]  ;;  %v28_v1 = vld [vmem:[%s2126_s2 + $0x8] sm:$0xff]  ;;  %v29_v2 = vld [vmem:[%s2126_s2 + $0x10] sm:$0xff]  ;;  %1258 = vset.pattern.permute.xlu0 %v1309_v6  ;;  %1256 = vset.pattern.permute.xlu1 %v2128_v7 }
   0x2   :  { %v1344_v3 = vmul.f32 640.0, %v27_v0  ;;  %v1346_v4 = vmul.f32 640.0, %v28_v1  ;;  %v1348_v5 = vmul.f32 640.0, %v29_v2  ;;  %v31_v8 = vld [vmem:[%s2126_s2 + $0x20] sm:$0xff]  ;;  %v30_v11 = vld [vmem:[%s2126_s2 + $0x18] sm:$0xff]  ;;  %v32_v12 = vld [vmem:[%s2126_s2 + $0x28] sm:$0xff] }
   0x3   :  { %v1366_v14 = vmul.f32 640.0, %v31_v8  ;;  %v1368_v15 = vmul.f32 640.0, %v30_v11  ;;  %v1370_v16 = vmul.f32 640.0, %v32_v12  ;;  %v33_v17 = vld [vmem:[%s2126_s2 + $0x30] sm:$0xff]  ;;  %v34_v18 = vld [vmem:[%s2126_s2 + $0x38] sm:$0xff] }
   0x4   :  { %v59_v9 = vmul.f32 0.5, %v1344_v3  ;;  %v61_v10 = vmul.f32 0.5, %v1348_v5  ;;  %v60_v13 = vmul.f32 0.5, %v1346_v4 }
   0x5   :  { %v62_v19 = vmul.f32 0.5, %v1368_v15 }
   0x6   :  { %91 = vrot.lane.b32.xlu0 %v59_v9, %s1311_s24  ;;  %95 = vrot.lane.b32.xlu1 %v61_v10, %s1311_s24 }
   0x7   :  { %9 = vsyncpa [#allocation6], 0  ;;  %v63_v20 = vmul.f32 0.5, %v1366_v14  ;;  %v1381_v21 = vmul.f32 640.0, %v33_v17  ;;  %v64_v22 = vmul.f32 0.5, %v1370_v16  ;;  %v1385_v23 = vmul.f32 640.0, %v34_v18 }
   0x8   :  { %v35_v24 = vld [vmem:[%s2126_s2 + $0x40] sm:$0xff]  ;;  %v36_v25 = vld [vmem:[%s2126_s2 + $0x48] sm:$0xff]  ;;  %v37_v30 = vld [vmem:[%s2126_s2 + $0x50] sm:$0xff]  ;;  %p1207_p0 = scmp.le.s32.totalorder %s2124_s0, 0 }
   0x9   :  { %v65_v26 = vmul.f32 0.5, %v1381_v21  ;;  %v1395_v27 = vmul.f32 640.0, %v35_v24  ;;  %v66_v28 = vmul.f32 0.5, %v1385_v23  ;;  %v1399_v29 = vmul.f32 640.0, %v36_v25  ;;  %v38_v31 = vld [vmem:[%s2126_s2 + $0x58] sm:$0xff]  ;;  %v39_v36 = vld [vmem:[%s2126_s2 + $0x60] sm:$0xff] }
   0xa   :  { %93 = vrot.lane.b32.xlu0 %v60_v13, %s1311_s24  ;;  %97 = vrot.lane.b32.xlu1 %v62_v19, %s1311_s24  ;;  %v1409_v33 = vmul.f32 640.0, %v37_v30  ;;  %v1413_v35 = vmul.f32 640.0, %v38_v31  ;;  %v40_v37 = vld [vmem:[%s2126_s2 + $0x68] sm:$0xff]  ;;  %v1423_v39 = vmul.f32 640.0, %v39_v36  ;;  %v41_v42 = vld [vmem:[%s2126_s2 + $0x70] sm:$0xff]  ;;  %s2050_s21 = smov (!%p1207_p0), 0  }
   0xb   :  { %v67_v32 = vmul.f32 0.5, %v1395_v27  ;;  %v68_v34 = vmul.f32 0.5, %v1399_v29  ;;  %v1427_v41 = vmul.f32 640.0, %v40_v37  ;;  %v42_v43 = vld [vmem:[%s2126_s2 + $0x78] sm:$0xff]  ;;  %v1437_v45 = vmul.f32 640.0, %v41_v42  ;;  %s1312_s2 = smov 127  }
   0xc   :  { %v69_v38 = vmul.f32 0.5, %v1409_v33  ;;  %v70_v40 = vmul.f32 0.5, %v1413_v35  ;;  %v71_v44 = vmul.f32 0.5, %v1423_v39  ;;  %v1441_v47 = vmul.f32 640.0, %v42_v43 }
   0xd   :  { %v72_v46 = vmul.f32 0.5, %v1427_v41  ;;  %v73_v48 = vmul.f32 0.5, %v1437_v45 }
   0xe   :  { %99 = vrot.lane.b32.xlu0 %v63_v20, %s1311_s24  ;;  %101 = vrot.lane.b32.xlu1 %v64_v22, %s1311_s24  ;;  %v74_v49 = vmul.f32 0.5, %v1441_v47 }
  0x12   :  { %103 = vrot.lane.b32.xlu0 %v65_v26, %s1311_s24  ;;  %105 = vrot.lane.b32.xlu1 %v66_v28, %s1311_s24 }
  0x16   :  { %107 = vrot.lane.b32.xlu0 %v67_v32, %s1311_s24  ;;  %109 = vrot.lane.b32.xlu1 %v68_v34, %s1311_s24 }
  0x1a   :  { %111 = vrot.lane.b32.xlu0 %v69_v38, %s1311_s24  ;;  %113 = vrot.lane.b32.xlu1 %v70_v40, %s1311_s24 }
  0x1e   :  { %115 = vrot.lane.b32.xlu0 %v71_v44, %s1311_s24  ;;  %117 = vrot.lane.b32.xlu1 %v72_v46, %s1311_s24 }
  0x22   :  { %119 = vrot.lane.b32.xlu0 %v73_v48, %s1311_s24  ;;  %121 = vrot.lane.b32.xlu1 %v74_v49, %s1311_s24 }
  0x78   :  { %v92_v50 = vpop.permute.xlu0 %91  ;;  %v96_v52 = vpop.permute.xlu1 %95 }
  0x79   :  { %v141_v54 = vsub.f32 %v1348_v5, %v96_v52  ;;  %v1464_v2 = vsub.f32 %v1344_v3, %v92_v50  ;;  %v1467_v8 = vadd.f32 %v92_v50, %v1344_v3  ;;  %v1471_v11 = vadd.f32 %v96_v52, %v1348_v5 }
  0x7b   :  { %v1475_v12 = vsub.f32 %v1467_v8, %v1464_v2  ;;  %v1483_v13 = vsub.f32 %v1471_v11, %v141_v54 }
  0x7c   :  { %v1449_v51 = vpop.permute.xlu0 %93  ;;  %v98_v10 = vpop.permute.xlu1 %97 }
  0x7d   :  { %v1453_v53 = vsub.f32 %v1346_v4, %v1449_v51  ;;  %v1498_v19 = vsub.f32 %v1368_v15, %v98_v10  ;;  %v156_v40 = vadd.f32 %v1449_v51, %v1346_v4  ;;  %v1546_v42 = vadd.f32 %v98_v10, %v1368_v15 }
  0x7f   :  { %372 = vperm.xlu0 %1258, %v1453_v53   ;;  %274 = vperm.xlu1 %1256, %v1453_v53   ;;  %v1549_v43 = vsub.f32 %v156_v40, %v1453_v53 }
  0x80   :  { %v100_v55 = vpop.permute.xlu0 %99  ;;  %v102_v17 = vpop.permute.xlu1 %101 }
  0x81   :  { %v143_v56 = vsub.f32 %v1366_v14, %v100_v55  ;;  %v1480_v3 = vadd.f32 %v100_v55, %v1366_v14  ;;  %v1555_v44 = vadd.f32 %v102_v17, %v1370_v16 }
  0x83   :  { %279 = vperm.xlu1 %1256, %v141_v54   ;;  %384 = vperm.xlu0 %1258, %v143_v56   ;;  %v1493_v18 = vsub.f32 %v1480_v3, %v143_v56 }
  0x84   :  { %v104_v57 = vpop.permute.xlu0 %103  ;;  %v106_v14 = vpop.permute.xlu1 %105 }
  0x85   :  { %v145_v58 = vsub.f32 %v1381_v21, %v104_v57  ;;  %v1490_v5 = vadd.f32 %v104_v57, %v1381_v21  ;;  %v144_v21 = vsub.f32 %v1370_v16, %v102_v17  ;;  %v1565_v4 = vadd.f32 %v106_v14, %v1385_v23  ;;  %v1679_v17 = vld [vmem:[%s2125_s1] sm:$0xff] }
  0x87   :  { %289 = vperm.xlu1 %1256, %v143_v56   ;;  %392 = vperm.xlu0 %1258, %v145_v58   ;;  %v1504_v22 = vsub.f32 %v1490_v5, %v145_v58  ;;  %v1568_v15 = vsub.f32 %v1555_v44, %v144_v21 }
  0x88   :  { %v108_v59 = vpop.permute.xlu0 %107  ;;  %v110_v26 = vpop.permute.xlu1 %109 }
  0x89   :  { %v147_v60 = vsub.f32 %v1395_v27, %v108_v59  ;;  %v1501_v20 = vadd.f32 %v108_v59, %v1395_v27  ;;  %v146_v27 = vsub.f32 %v1385_v23, %v106_v14  ;;  %v148_v32 = vsub.f32 %v1399_v29, %v110_v26 }
  0x8a   :  { %v1574_v16 = vadd.f32 %v110_v26, %v1399_v29 }
  0x8b   :  { %299 = vperm.xlu1 %1256, %v145_v58   ;;  %400 = vperm.xlu0 %1258, %v147_v60   ;;  %v1514_v25 = vsub.f32 %v1501_v20, %v147_v60  ;;  %v1577_v46 = vsub.f32 %v1565_v4, %v146_v27 }
  0x8c   :  { %v112_v61 = vpop.permute.xlu0 %111  ;;  %v114_v31 = vpop.permute.xlu1 %113  ;;  %v1586_v48 = vsub.f32 %v1574_v16, %v148_v32 }
  0x8d   :  { %v149_v62 = vsub.f32 %v1409_v33, %v112_v61  ;;  %v1511_v24 = vadd.f32 %v112_v61, %v1409_v33  ;;  %v150_v36 = vsub.f32 %v1413_v35, %v114_v31  ;;  %v1583_v23 = vadd.f32 %v114_v31, %v1413_v35 }
  0x8f   :  { %309 = vperm.xlu1 %1256, %v147_v60   ;;  %408 = vperm.xlu0 %1258, %v149_v62   ;;  %v1523_v30 = vsub.f32 %v1511_v24, %v149_v62  ;;  %v1595_v50 = vsub.f32 %v1583_v23, %v150_v36 }
  0x90   :  { %v116_v63 = vpop.permute.xlu0 %115  ;;  %v118_v38 = vpop.permute.xlu1 %117 }
  0x91   :  { %v151_v0 = vsub.f32 %v1423_v39, %v116_v63  ;;  %v1520_v28 = vadd.f32 %v116_v63, %v1423_v39  ;;  %v152_v39 = vsub.f32 %v1427_v41, %v118_v38  ;;  %v1592_v49 = vadd.f32 %v118_v38, %v1427_v41 }
  0x93   :  { %319 = vperm.xlu1 %1256, %v149_v62   ;;  %416 = vperm.xlu0 %1258, %v151_v0   ;;  %v1532_v34 = vsub.f32 %v1520_v28, %v151_v0  ;;  %v1605_v52 = vsub.f32 %v1592_v49, %v152_v39 }
  0x94   :  { %v120_v1 = vpop.permute.xlu0 %119  ;;  %v122_v29 = vpop.permute.xlu1 %121 }
  0x95   :  { %v153_v9 = vsub.f32 %v1437_v45, %v120_v1  ;;  %v1529_v33 = vadd.f32 %v120_v1, %v1437_v45  ;;  %v1559_v45 = vsub.f32 %v1546_v42, %v1498_v19  ;;  %v154_v35 = vsub.f32 %v1441_v47, %v122_v29 }
  0x96   :  { %v1602_v51 = vadd.f32 %v122_v29, %v1441_v47 }
  0x97   :  { %329 = vperm.xlu1 %1256, %v151_v0   ;;  %424 = vperm.xlu0 %1258, %v153_v9   ;;  %v1538_v37 = vsub.f32 %v1529_v33, %v153_v9 }
  0x98   :  { %v1612_v41 = vsub.f32 %v1602_v51, %v154_v35 }
  0x9b   :  { %203 = vrot.lane.b32.xlu0 %v1475_v12, %s1312_s2  ;;  %339 = vperm.xlu1 %1256, %v153_v9  }
  0x9f   :  { %207 = vrot.lane.b32.xlu0 %v1483_v13, %s1312_s2  ;;  %1257 = vset.pattern.permute.xlu1 %v1309_v6 }
  0xa0   :  { %368 = vperm.xlu1 %1257, %v1464_v2  }
  0xa3   :  { %211 = vrot.lane.b32.xlu0 %v1493_v18, %s1312_s2 }
  0xa4   :  { %376 = vperm.xlu1 %1257, %v141_v54  }
  0xa7   :  { %215 = vrot.lane.b32.xlu0 %v1504_v22, %s1312_s2 }
  0xa8   :  { %380 = vperm.xlu1 %1257, %v1498_v19  }
  0xab   :  { %219 = vrot.lane.b32.xlu0 %v1514_v25, %s1312_s2 }
  0xac   :  { %388 = vperm.xlu1 %1257, %v144_v21  }
  0xaf   :  { %223 = vrot.lane.b32.xlu0 %v1523_v30, %s1312_s2 }
  0xb0   :  { %396 = vperm.xlu1 %1257, %v146_v27  }
  0xb3   :  { %227 = vrot.lane.b32.xlu0 %v1532_v34, %s1312_s2 }
  0xb4   :  { %404 = vperm.xlu1 %1257, %v148_v32  }
  0xb7   :  { %231 = vrot.lane.b32.xlu0 %v1538_v37, %s1312_s2 }
  0xb8   :  { %412 = vperm.xlu1 %1257, %v150_v36  }
  0xbb   :  { %556 = vperm.xlu0 %1258, %v156_v40  }
  0xbc   :  { %420 = vperm.xlu1 %1257, %v152_v39  }
  0xbf   :  { %568 = vperm.xlu0 %1258, %v1480_v3  }
  0xc0   :  { %205 = vrot.lane.b32.xlu1 %v1549_v43, %s1312_s2 }
  0xc3   :  { %576 = vperm.xlu0 %1258, %v1490_v5  }
  0xc4   :  { %209 = vrot.lane.b32.xlu1 %v1559_v45, %s1312_s2 }
  0xc7   :  { %584 = vperm.xlu0 %1258, %v1501_v20  }
  0xc8   :  { %213 = vrot.lane.b32.xlu1 %v1568_v15, %s1312_s2 }
  0xcb   :  { %592 = vperm.xlu0 %1258, %v1511_v24  }
  0xcc   :  { %217 = vrot.lane.b32.xlu1 %v1577_v46, %s1312_s2 }
  0xcf   :  { %600 = vperm.xlu0 %1258, %v1520_v28  }
  0xd0   :  { %221 = vrot.lane.b32.xlu1 %v1586_v48, %s1312_s2 }
  0xd3   :  { %608 = vperm.xlu0 %1258, %v1529_v33  }
  0xd4   :  { %225 = vrot.lane.b32.xlu1 %v1595_v50, %s1312_s2 }
  0xd7   :  { %1261 = vset.pattern.permute.xlu0 %v2128_v7 }
  0xd8   :  { %229 = vrot.lane.b32.xlu1 %v1605_v52, %s1312_s2  ;;  %269 = vperm.xlu0 %1261, %v1464_v2  }
  0xdc   :  { %233 = vrot.lane.b32.xlu1 %v1612_v41, %s1312_s2  ;;  %284 = vperm.xlu0 %1261, %v1498_v19  }
  0xe0   :  { %428 = vperm.xlu1 %1257, %v154_v35   ;;  %294 = vperm.xlu0 %1261, %v144_v21  }
  0xe4   :  { %1259 = vset.pattern.permute.xlu1 %v2128_v7  ;;  %304 = vperm.xlu0 %1261, %v146_v27  }
  0xe5   :  { %458 = vperm.xlu1 %1259, %v156_v40  }
  0xe8   :  { %314 = vperm.xlu0 %1261, %v148_v32  }
  0xe9   :  { %463 = vperm.xlu1 %1259, %v1471_v11  }
  0xec   :  { %324 = vperm.xlu0 %1261, %v150_v36  }
  0xed   :  { %473 = vperm.xlu1 %1259, %v1480_v3  }
  0xf0   :  { %334 = vperm.xlu0 %1261, %v152_v39  }
  0xf1   :  { %483 = vperm.xlu1 %1259, %v1490_v5  }
  0xf4   :  { %344 = vperm.xlu0 %1261, %v154_v35  }
  0xf5   :  { %493 = vperm.xlu1 %1259, %v1501_v20   ;;  %v347_v20 = vlaneseq }
  0xf7   :  { %v1692_v27 = vshrl.u32 %v347_v20, 7 }
  0xf8   :  { %453 = vperm.xlu0 %1261, %v1467_v8  }
  0xf9   :  { %503 = vperm.xlu1 %1259, %v1511_v24   ;;  %v433_v36 = vsub.s32 1, %v1692_v27 }
  0xfa   :  { %v1624_v47 = vpop.permute.xlu1 %274  ;;  %v1626_v53 = vpop.permute.xlu0 %372 }
  0xfc   :  { %468 = vperm.xlu0 %1261, %v1546_v42  }
  0xfd   :  { %513 = vperm.xlu1 %1259, %v1520_v28  }
  0xfe   :  { %v1630_v54 = vpop.permute.xlu1 %279  ;;  %v1632_v55 = vpop.permute.xlu0 %384 }
 0x100   :  { %478 = vperm.xlu0 %1261, %v1555_v44  }
 0x101   :  { %523 = vperm.xlu1 %1259, %v1529_v33  }
 0x102   :  { %v1636_v56 = vpop.permute.xlu1 %289  ;;  %v1638_v57 = vpop.permute.xlu0 %392 }
 0x104   :  { %488 = vperm.xlu0 %1261, %v1565_v4  }
 0x105   :  { %1260 = vset.pattern.permute.xlu1 %v1309_v6 }
 0x106   :  { %v1642_v58 = vpop.permute.xlu1 %299  ;;  %552 = vperm.xlu1 %1260, %v1467_v8   ;;  %v1645_v59 = vpop.permute.xlu0 %400 }
 0x108   :  { %498 = vperm.xlu0 %1261, %v1574_v16  }
 0x10a   :  { %v1648_v60 = vpop.permute.xlu1 %309  ;;  %560 = vperm.xlu1 %1260, %v1471_v11   ;;  %v1651_v61 = vpop.permute.xlu0 %408 }
 0x10c   :  { %508 = vperm.xlu0 %1261, %v1583_v23  }
 0x10e   :  { %v1654_v62 = vpop.permute.xlu1 %319  ;;  %564 = vperm.xlu1 %1260, %v1546_v42   ;;  %v1657_v6 = vpop.permute.xlu0 %416 }
 0x110   :  { %518 = vperm.xlu0 %1261, %v1592_v49  }
 0x112   :  { %v1660_v63 = vpop.permute.xlu1 %329  ;;  %572 = vperm.xlu1 %1260, %v1555_v44   ;;  %v1663_v0 = vpop.permute.xlu0 %424 }
 0x114   :  { %528 = vperm.xlu0 %1261, %v1602_v51  }
 0x116   :  { %580 = vperm.xlu1 %1260, %v1565_v4   ;;  %v1667_v1 = vpop.permute.xlu1 %339  ;;  %v204_v2 = vpop.permute.xlu0 %203 }
 0x117   :  { %v251_v8 = vmul.f32 %v204_v2, %v1475_v12  ;;  %v15_v12 = vmul.f32 640.0, %v1679_v17 }
 0x119   :  { %717 = vperm.xlu0 %1261, %v251_v8   ;;  %v16_v21 = vmul.f32 0.5, %v15_v12 }
 0x11a   :  { %588 = vperm.xlu1 %1260, %v1574_v16   ;;  %v208_v9 = vpop.permute.xlu0 %207 }
 0x11b   :  { %v1671_v10 = vpop.permute.xlu1 %368  ;;  %v18_v28 = vrot.slane %v16_v21, 2 }
 0x11d   :  { %v1698_v33 = vsub.f32 %v15_v12, %v18_v28  ;;  %v1703_v39 = vadd.f32 %v18_v28, %v15_v12 }
 0x11e   :  { %596 = vperm.xlu1 %1260, %v1583_v23   ;;  %v212_v11 = vpop.permute.xlu0 %211 }
 0x11f   :  { %v1674_v3 = vpop.permute.xlu1 %376  ;;  %v1708_v42 = vrot.slane %v1698_v33, %v433_v36  ;;  %v1713_v4 = vrot.slane %v1703_v39, %v433_v36 }
 0x121   :  { %v436_v23 = vmax.f32 %v1626_v53, %v1708_v42  ;;  %v439_v2 = vmax.f32 %v1632_v55, %v1708_v42  ;;  %v441_v53 = vmax.f32 %v1638_v57, %v1708_v42  ;;  %v255_v57 = vmul.f32 %v212_v11, %v1493_v18 }
 0x122   :  { %604 = vperm.xlu1 %1260, %v1592_v49   ;;  %v216_v5 = vpop.permute.xlu0 %215 }
 0x123   :  { %v1683_v14 = vpop.permute.xlu1 %380 }
 0x126   :  { %612 = vperm.xlu1 %1260, %v1602_v51   ;;  %v220_v19 = vpop.permute.xlu0 %219 }
 0x127   :  { %v1686_v24 = vpop.permute.xlu1 %388 }
 0x12a   :  { %v1688_v26 = vpop.permute.xlu0 %223  ;;  %1262 = vset.pattern.permute.xlu1 %v2128_v7 }
 0x12b   :  { %v1694_v31 = vpop.permute.xlu1 %396 }
 0x12e   :  { %v1696_v32 = vpop.permute.xlu0 %227 }
 0x12f   :  { %v1701_v38 = vpop.permute.xlu1 %404 }
 0x132   :  { %v1705_v40 = vpop.permute.xlu0 %231 }
 0x133   :  { %v1710_v44 = vpop.permute.xlu1 %412 }
 0x136   :  { %v557_v16 = vpop.permute.xlu0 %556 }
 0x137   :  { %v620_v29 = vmin.f32 %v557_v16, %v1713_v4  ;;  %v1718_v49 = vpop.permute.xlu1 %420 }
 0x139   :  { %v1720_v35 = vsub.f32 %v620_v29, %v436_v23  ;;  %v253_v29 = vmul.f32 %v208_v9, %v1483_v13 }
 0x13a   :  { %v569_v51 = vpop.permute.xlu0 %568 }
 0x13b   :  { %v623_v8 = vmin.f32 %v569_v51, %v1713_v4  ;;  %v206_v12 = vpop.permute.xlu1 %205 }
 0x13c   :  { %v252_v21 = vmul.f32 %v206_v12, %v1549_v43  ;;  %v443_v43 = vmax.f32 %v1645_v59, %v1708_v42  ;;  %v257_v59 = vmul.f32 %v216_v5, %v1504_v22 }
 0x13d   :  { %v1726_v28 = vsub.f32 %v623_v8, %v439_v2 }
 0x13e   :  { %722 = vperm.xlu1 %1262, %v252_v21   ;;  %v577_v36 = vpop.permute.xlu0 %576 }
 0x13f   :  { %v625_v16 = vmin.f32 %v577_v36, %v1713_v4  ;;  %v210_v23 = vpop.permute.xlu1 %209 }
 0x140   :  { %v254_v7 = vmul.f32 %v210_v23, %v1559_v45 }
 0x141   :  { %v1733_v55 = vsub.f32 %v625_v16, %v441_v53 }
 0x142   :  { %732 = vperm.xlu0 %1261, %v254_v7   ;;  %727 = vperm.xlu1 %1262, %v253_v29   ;;  %v585_v51 = vpop.permute.xlu0 %584  ;;  %v445_v7 = vmax.f32 %v1651_v61, %v1708_v42  ;;  %v259_v61 = vmul.f32 %v220_v19, %v1514_v25  ;;  %v263_v19 = vmul.f32 %v1696_v32, %v1532_v34 }
 0x143   :  { %v627_v2 = vmin.f32 %v585_v51, %v1713_v4  ;;  %v214_v8 = vpop.permute.xlu1 %213 }
 0x144   :  { %v256_v12 = vmul.f32 %v214_v8, %v1568_v15  ;;  %v447_v15 = vmax.f32 %v1657_v6, %v1708_v42  ;;  %v261_v6 = vmul.f32 %v1688_v26, %v1523_v30  ;;  %v265_v30 = vmul.f32 %v1705_v40, %v1538_v37 }
 0x145   :  { %v1740_v21 = vsub.f32 %v627_v2, %v443_v43  ;;  %v1773_v26 = vsub.s32 0, %v1692_v27 }
 0x146   :  { %742 = vperm.xlu0 %1261, %v256_v12   ;;  %737 = vperm.xlu1 %1262, %v255_v57   ;;  %v593_v13 = vpop.permute.xlu0 %592 }
 0x147   :  { %v629_v45 = vmin.f32 %v593_v13, %v1713_v4  ;;  %v218_v9 = vpop.permute.xlu1 %217  ;;  %v1781_v34 = vrot.slane %v1698_v33, %v1773_v26 }
 0x148   :  { %v258_v36 = vmul.f32 %v218_v9, %v1577_v46  ;;  %v449_v46 = vmax.f32 %v1663_v0, %v1708_v42 }
 0x149   :  { %v1747_v53 = vsub.f32 %v629_v45, %v445_v7  ;;  %v352_v32 = vmax.f32 %v1624_v47, %v1781_v34 }
 0x14a   :  { %752 = vperm.xlu0 %1261, %v258_v36   ;;  %747 = vperm.xlu1 %1262, %v257_v59   ;;  %v601_v18 = vpop.permute.xlu0 %600  ;;  %v353_v59 = vmax.f32 %v1630_v54, %v1781_v34  ;;  %v684_v36 = vmax.f32 %v1720_v35, 0.0  ;;  %v357_v35 = vmax.f32 %v1642_v58, %v1781_v34 }
 0x14b   :  { %v631_v11 = vmin.f32 %v601_v18, %v1713_v4  ;;  %v222_v16 = vpop.permute.xlu1 %221 }
 0x14c   :  { %v260_v23 = vmul.f32 %v222_v16, %v1586_v48 }
 0x14d   :  { %v1754_v29 = vsub.f32 %v631_v11, %v447_v15 }
 0x14e   :  { %762 = vperm.xlu0 %1261, %v260_v23   ;;  %757 = vperm.xlu1 %1262, %v259_v61   ;;  %v609_v22 = vpop.permute.xlu0 %608  ;;  %v355_v23 = vmax.f32 %v1636_v56, %v1781_v34 }
 0x14f   :  { %v633_v5 = vmin.f32 %v609_v22, %v1713_v4  ;;  %v226_v51 = vpop.permute.xlu1 %225 }
 0x150   :  { %v262_v43 = vmul.f32 %v226_v51, %v1595_v50  ;;  %v687_v51 = vmax.f32 %v1726_v28, 0.0 }
 0x151   :  { %v1762_v2 = vsub.f32 %v633_v5, %v449_v46 }
 0x152   :  { %772 = vperm.xlu0 %1261, %v262_v43   ;;  %767 = vperm.xlu1 %1262, %v261_v6  }
 0x153   :  { %v230_v25 = vpop.permute.xlu1 %229  ;;  %v1764_v48 = vpop.permute.xlu0 %269 }
 0x154   :  { %v264_v0 = vmul.f32 %v230_v25, %v1605_v52  ;;  %v1785_v52 = vrot.slane %v1703_v39, %v1773_v26 }
 0x156   :  { %782 = vperm.xlu0 %1261, %v264_v0   ;;  %777 = vperm.xlu1 %1262, %v263_v19  }
 0x157   :  { %v234_v8 = vpop.permute.xlu1 %233  ;;  %v285_v57 = vpop.permute.xlu0 %284 }
 0x158   :  { %v266_v50 = vmul.f32 %v234_v8, %v1612_v41  ;;  %v359_v8 = vmax.f32 %v1648_v60, %v1781_v34 }
 0x15a   :  { %792 = vperm.xlu0 %1261, %v266_v50   ;;  %787 = vperm.xlu1 %1262, %v265_v30   ;;  %v689_v30 = vmax.f32 %v1733_v55, 0.0 }
 0x15b   :  { %v1775_v12 = vpop.permute.xlu1 %428  ;;  %v1777_v13 = vpop.permute.xlu0 %294 }
 0x15f   :  { %v1787_v37 = vpop.permute.xlu0 %304 }
 0x160   :  { %v459_v41 = vpop.permute.xlu1 %458 }
 0x161   :  { %v536_v40 = vmin.f32 %v459_v41, %v1785_v52 }
 0x163   :  { %v636_v7 = vsub.f32 %v536_v40, %v352_v32  ;;  %v1792_v45 = vpop.permute.xlu0 %314 }
 0x164   :  { %v464_v9 = vpop.permute.xlu1 %463 }
 0x165   :  { %v652_v18 = vmax.f32 %v636_v7, 0.0  ;;  %v537_v15 = vmin.f32 %v464_v9, %v1785_v52  ;;  %v361_v7 = vmax.f32 %v1654_v62, %v1781_v34  ;;  %v691_v9 = vmax.f32 %v1740_v21, 0.0 }
 0x167   :  { %v1798_v11 = vsub.f32 %v537_v15, %v353_v59  ;;  %v1800_v16 = vpop.permute.xlu0 %324  ;;  %v1802_v61 = vmul.f32 %v684_v36, %v652_v18  ;;  %v354_v15 = vmax.f32 %v285_v57, %v1781_v34  ;;  %v356_v57 = vmax.f32 %v1777_v13, %v1781_v34 }
 0x168   :  { %v474_v47 = vpop.permute.xlu1 %473  ;;  %v358_v13 = vmax.f32 %v1787_v37, %v1781_v34  ;;  %v22_v37 = vsub.f32 %v1703_v39, %v1698_v33 }
 0x169   :  { %v539_v22 = vmin.f32 %v474_v47, %v1785_v52 }
 0x16a   :  { %v24_v39 = vrot.slane %v22_v37, 1 }
 0x16b   :  { %v639_v46 = vsub.f32 %v539_v22, %v355_v23  ;;  %v1807_v5 = vpop.permute.xlu0 %334  ;;  %v363_v22 = vmax.f32 %v1660_v63, %v1781_v34  ;;  %v365_v63 = vmax.f32 %v1667_v1, %v1781_v34 }
 0x16c   :  { %v484_v54 = vpop.permute.xlu1 %483 }
 0x16d   :  { %v655_v6 = vmax.f32 %v639_v46, 0.0  ;;  %v541_v43 = vmin.f32 %v484_v54, %v1785_v52  ;;  %v693_v46 = vmax.f32 %v1747_v53, 0.0  ;;  %v695_v53 = vmax.f32 %v1754_v29, 0.0 }
 0x16f   :  { %v641_v25 = vsub.f32 %v541_v43, %v357_v35  ;;  %v1813_v19 = vpop.permute.xlu0 %344  ;;  %v1815_v0 = vmul.f32 %v687_v51, %v655_v6 }
 0x170   :  { %v494_v56 = vpop.permute.xlu1 %493 }
 0x171   :  { %v657_v50 = vmax.f32 %v641_v25, 0.0  ;;  %v543_v41 = vmin.f32 %v494_v56, %v1785_v52 }
 0x173   :  { %v643_v58 = vsub.f32 %v543_v41, %v359_v8  ;;  %v1821_v32 = vpop.permute.xlu0 %453  ;;  %v1823_v28 = vmul.f32 %v689_v30, %v657_v50 }
 0x174   :  { %v504_v40 = vpop.permute.xlu1 %503 }
 0x175   :  { %v659_v59 = vmax.f32 %v643_v58, 0.0  ;;  %v545_v36 = vmin.f32 %v504_v40, %v1785_v52 }
 0x177   :  { %v645_v60 = vsub.f32 %v545_v36, %v361_v7  ;;  %v469_v18 = vpop.permute.xlu0 %468  ;;  %v1829_v55 = vmul.f32 %v691_v9, %v659_v59  ;;  %v697_v7 = vmax.f32 %v1762_v2, 0.0 }
 0x178   :  { %v538_v47 = vmin.f32 %v469_v18, %v1785_v52  ;;  %v514_v23 = vpop.permute.xlu1 %513 }
 0x179   :  { %v661_v62 = vmax.f32 %v645_v60, 0.0  ;;  %v547_v21 = vmin.f32 %v514_v23, %v1785_v52  ;;  %v360_v60 = vmax.f32 %v1792_v45, %v1781_v34 }
 0x17a   :  { %v1837_v54 = vsub.f32 %v538_v47, %v354_v15  ;;  %v437_v47 = vmax.f32 %v1674_v3, %v1708_v42  ;;  %v653_v3 = vmax.f32 %v1798_v11, 0.0  ;;  %v440_v11 = vmax.f32 %v1686_v24, %v1708_v42 }
 0x17b   :  { %v647_v35 = vsub.f32 %v547_v21, %v363_v22  ;;  %v479_v51 = vpop.permute.xlu0 %478  ;;  %v1839_v6 = vmul.f32 %v693_v46, %v661_v62  ;;  %v362_v46 = vmax.f32 %v1800_v16, %v1781_v34  ;;  %v438_v21 = vmax.f32 %v1683_v14, %v1708_v42 }
 0x17c   :  { %v540_v43 = vmin.f32 %v479_v51, %v1785_v52  ;;  %v524_v25 = vpop.permute.xlu1 %523  ;;  %v435_v16 = vmax.f32 %v1671_v10, %v1708_v42  ;;  %v364_v14 = vmax.f32 %v1807_v5, %v1781_v34 }
 0x17d   :  { %v663_v56 = vmax.f32 %v647_v35, 0.0  ;;  %v549_v8 = vmin.f32 %v524_v25, %v1785_v52  ;;  %v535_v25 = vmin.f32 %v1821_v32, %v1785_v52  ;;  %v654_v32 = vmax.f32 %v1837_v54, 0.0 }
 0x17e   :  { %v1848_v30 = vsub.f32 %v540_v43, %v356_v57 }
 0x17f   :  { %v649_v50 = vsub.f32 %v549_v8, %v365_v63  ;;  %v489_v41 = vpop.permute.xlu0 %488  ;;  %v1850_v58 = vmul.f32 %v695_v53, %v663_v56 }
 0x180   :  { %v542_v40 = vmin.f32 %v489_v41, %v1785_v52 }
 0x181   :  { %v665_v9 = vmax.f32 %v649_v50, 0.0  ;;  %v553_v1 = vpop.permute.xlu1 %552  ;;  %v351_v50 = vmax.f32 %v1764_v48, %v1781_v34  ;;  %v442_v48 = vmax.f32 %v1694_v31, %v1708_v42 }
 0x182   :  { %v1856_v59 = vsub.f32 %v542_v40, %v358_v13  ;;  %v619_v35 = vmin.f32 %v553_v1, %v1713_v4  ;;  %v26_v13 = vmul.f32 %v24_v39, %v22_v37 }
 0x183   :  { %v499_v29 = vpop.permute.xlu0 %498  ;;  %v1858_v36 = vmul.f32 %v697_v7, %v665_v9  ;;  %v635_v9 = vsub.f32 %v535_v25, %v351_v50 }
 0x184   :  { %v544_v18 = vmin.f32 %v499_v29, %v1785_v52  ;;  %v667_v41 = vsub.f32 %v619_v35, %v435_v16  ;;  %v366_v29 = vmax.f32 %v1813_v19, %v1781_v34  ;;  %v1903_v54 = vrot.slane %v26_v13, %v1773_v26 }
 0x185   :  { %v561_v15 = vpop.permute.xlu1 %560  ;;  %v651_v19 = vmax.f32 %v635_v9, 0.0  ;;  %v1910_v35 = vand.u32 127, %v347_v20 }
 0x186   :  { %v1867_v2 = vsub.f32 %v544_v18, %v360_v60  ;;  %v621_v23 = vmin.f32 %v561_v15, %v1713_v4  ;;  %v683_v15 = vmax.f32 %v667_v41, 0.0  ;;  %v1313_v41 = vmov 0.0  }
 0x187   :  { %v509_v22 = vpop.permute.xlu0 %508  ;;  %vm882_vm0 = vcmp.gt.s32.totalorder %v1910_v35, %v1692_v27 }
 0x188   :  { %v669_v62 = vsub.f32 %v621_v23, %v437_v47  ;;  %v546_v45 = vmin.f32 %v509_v22, %v1785_v52  ;;  %v656_v47 = vmax.f32 %v1848_v30, 0.0  ;;  %v699_v31 = vmul.f32 %v683_v15, %v651_v19 }
 0x189   :  { %v565_v33 = vpop.permute.xlu1 %564  ;;  %v658_v30 = vmax.f32 %v1856_v59, 0.0 }
 0x18a   :  { %v685_v51 = vmax.f32 %v669_v62, 0.0  ;;  %v1877_v57 = vsub.f32 %v546_v45, %v362_v46  ;;  %v622_v43 = vmin.f32 %v565_v33, %v1713_v4 }
 0x18b   :  { %v519_v63 = vpop.permute.xlu0 %518 }
 0x18c   :  { %v670_v53 = vsub.f32 %v622_v43, %v438_v21  ;;  %v548_v56 = vmin.f32 %v519_v63, %v1785_v52  ;;  %v1887_v8 = vmul.f32 %v685_v51, %v653_v3  ;;  %v444_v3 = vmax.f32 %v1701_v38, %v1708_v42 }
 0x18d   :  { %v573_v10 = vpop.permute.xlu1 %572 }
 0x18e   :  { %v686_v40 = vmax.f32 %v670_v53, 0.0  ;;  %v648_v7 = vsub.f32 %v548_v56, %v364_v14  ;;  %v624_v5 = vmin.f32 %v573_v10, %v1713_v4  ;;  %v446_v53 = vmax.f32 %v1710_v44, %v1708_v42 }
 0x18f   :  { %v529_v1 = vpop.permute.xlu0 %528  ;;  %v660_v56 = vmax.f32 %v1867_v2, 0.0 }
 0x190   :  { %v672_v60 = vsub.f32 %v624_v5, %v440_v11  ;;  %v550_v24 = vmin.f32 %v529_v1, %v1785_v52  ;;  %v1898_v18 = vmul.f32 %v686_v40, %v654_v32  ;;  %v448_v32 = vmax.f32 %v1718_v49, %v1708_v42 }
 0x191   :  { %v581_v37 = vpop.permute.xlu1 %580  ;;  %v662_v40 = vmax.f32 %v1877_v57, 0.0 }
 0x192   :  { %v688_v23 = vmax.f32 %v672_v60, 0.0  ;;  %v650_v22 = vsub.f32 %v550_v24, %v366_v29  ;;  %v626_v46 = vmin.f32 %v581_v37, %v1713_v4  ;;  %v450_v29 = vmax.f32 %v1775_v12, %v1708_v42 }
 0x193   :  { %v664_v60 = vmax.f32 %v648_v7, 0.0  ;;  %v834_v12 = vadd.s32 16, %v1692_v27 }
 0x194   :  { %v674_v62 = vsub.f32 %v626_v46, %v442_v48  ;;  %v718_v45 = vpop.permute.xlu0 %717  ;;  %v1907_v21 = vmul.f32 %v688_v23, %v656_v47  ;;  %v666_v49 = vmax.f32 %v650_v22, 0.0  ;;  %v833_v46 = vadd.s32 8, %v1692_v27 }
 0x195   :  { %v799_v33 = vadd.f32 %v1903_v54, %v718_v45  ;;  %v589_v39 = vpop.permute.xlu1 %588  ;;  %vm884_vm6 = vcmp.gt.s32.totalorder %v1910_v35, %v834_v12  ;;  %v842_v12 = vadd.s32 80, %v1692_v27 }
 0x196   :  { %v690_v51 = vmax.f32 %v674_v62, 0.0  ;;  %v628_v43 = vmin.f32 %v589_v39, %v1713_v4  ;;  %vm883_vm3 = vcmp.gt.s32.totalorder %v1910_v35, %v833_v46  ;;  %v835_v39 = vadd.s32 24, %v1692_v27 }
 0x197   :  { %v815_v16 = vsub.f32 %v799_v33, %v699_v31 }
 0x198   :  { %v676_v25 = vsub.f32 %v628_v43, %v444_v3  ;;  %v1917_v63 = vmul.f32 %v690_v51, %v658_v30  ;;  %v836_v51 = vadd.s32 32, %v1692_v27  ;;  %vm885_vm7 = vcmp.gt.s32.totalorder %v1910_v35, %v835_v39 }
 0x199   :  { %v850_v20 = vmul.f32 0.5, %v815_v16  ;;  %v597_v14 = vpop.permute.xlu1 %596 }
 0x19a   :  { %v692_v38 = vmax.f32 %v676_v25, 0.0  ;;  %v630_v59 = vmin.f32 %v597_v14, %v1713_v4  ;;  %vm886_vm11 = vcmp.gt.s32.totalorder %v1910_v35, %v836_v51 }
 0x19b   :  { %vm866_vm1 = vcmp.gt.f32.partialorder %v699_v31, %v850_v20 }
 0x19c   :  { %vm898_vm2 = vmand %vm866_vm1, %vm882_vm0  ;;  %v678_v11 = vsub.f32 %v630_v59, %v446_v53  ;;  %v1925_v50 = vmul.f32 %v692_v38, %v660_v56 }
 0x19d   :  { %v1191_v10 = vsel %vm898_vm2, 1.0, %v1313_v41  ;;  %v605_v13 = vpop.permute.xlu1 %604 }
 0x19e   :  { %946 = vst [vmem:[#allocation2] sm:$0xff] %v1191_v10  ;;  %v694_v44 = vmax.f32 %v678_v11, 0.0  ;;  %v632_v2 = vmin.f32 %v605_v13, %v1713_v4  ;;  %v838_v11 = vadd.s32 48, %v1692_v27 }
 0x1a0   :  { %v680_v5 = vsub.f32 %v632_v2, %v448_v32  ;;  %v1932_v9 = vmul.f32 %v694_v44, %v662_v40  ;;  %vm888_vm1 = vcmp.gt.s32.totalorder %v1910_v35, %v838_v11  ;;  %v846_v11 = vadd.s32 112, %v1692_v27 }
 0x1a1   :  { %v613_v1 = vpop.permute.xlu1 %612 }
 0x1a2   :  { %v696_v24 = vmax.f32 %v680_v5, 0.0  ;;  %v634_v48 = vmin.f32 %v613_v1, %v1713_v4  ;;  %v839_v5 = vadd.s32 56, %v1692_v27 }
 0x1a4   :  { %v682_v15 = vsub.f32 %v634_v48, %v450_v29  ;;  %v1937_v37 = vmul.f32 %v696_v24, %v664_v60  ;;  %v840_v60 = vadd.s32 64, %v1692_v27 }
 0x1a6   :  { %v698_v57 = vmax.f32 %v682_v15, 0.0 }
 0x1a8   :  { %v1939_v47 = vmul.f32 %v698_v57, %v666_v49 }
 0x1b9   :  { %v723_v23 = vpop.permute.xlu1 %722 }
 0x1ba   :  { %v800_v19 = vadd.f32 %v1903_v54, %v723_v23 }
 0x1bc   :  { %v816_v62 = vsub.f32 %v800_v19, %v1802_v61 }
 0x1bd   :  { %v728_v7 = vpop.permute.xlu1 %727  ;;  %v733_v45 = vpop.permute.xlu0 %732 }
 0x1be   :  { %v851_v31 = vmul.f32 0.5, %v816_v62  ;;  %v801_v33 = vadd.f32 %v1903_v54, %v728_v7  ;;  %v802_v22 = vadd.f32 %v1903_v54, %v733_v45 }
 0x1c0   :  { %vm867_vm4 = vcmp.gt.f32.partialorder %v1802_v61, %v851_v31  ;;  %v817_v3 = vsub.f32 %v801_v33, %v1887_v8  ;;  %v818_v30 = vsub.f32 %v802_v22, %v1898_v18  ;;  %v837_v61 = vadd.s32 40, %v1692_v27 }
 0x1c1   :  { %vm899_vm5 = vmand %vm867_vm4, %vm883_vm3  ;;  %v738_v43 = vpop.permute.xlu1 %737  ;;  %v743_v16 = vpop.permute.xlu0 %742  ;;  %vm889_vm3 = vcmp.gt.s32.totalorder %v1910_v35, %v839_v5 }
 0x1c2   :  { %v1192_v25 = vsel %vm899_vm5, 1.0, %v1313_v41  ;;  %v852_v20 = vmul.f32 0.5, %v817_v3  ;;  %v853_v14 = vmul.f32 0.5, %v818_v30  ;;  %v803_v53 = vadd.f32 %v1903_v54, %v738_v43 }
 0x1c3   :  { %947 = vst [vmem:[#allocation2 + $0x8] sm:$0xff] %v1192_v25  ;;  %v804_v56 = vadd.f32 %v1903_v54, %v743_v16  ;;  %vm887_vm13 = vcmp.gt.s32.totalorder %v1910_v35, %v837_v61  ;;  %v843_v3 = vadd.s32 88, %v1692_v27  ;;  %v844_v43 = vadd.s32 96, %v1692_v27 }
 0x1c4   :  { %vm868_vm8 = vcmp.gt.f32.partialorder %v1887_v8, %v852_v20  ;;  %vm869_vm9 = vcmp.gt.f32.partialorder %v1898_v18, %v853_v14  ;;  %v819_v38 = vsub.f32 %v803_v53, %v1815_v0 }
 0x1c5   :  { %vm900_vm10 = vmand %vm868_vm8, %vm884_vm6  ;;  %v820_v59 = vsub.f32 %v804_v56, %v1907_v21  ;;  %v748_v10 = vpop.permute.xlu1 %747  ;;  %v753_v13 = vpop.permute.xlu0 %752 }
 0x1c6   :  { %v1193_v32 = vsel %vm900_vm10, 1.0, %v1313_v41  ;;  %vm901_vm12 = vmand %vm869_vm9, %vm885_vm7  ;;  %v854_v40 = vmul.f32 0.5, %v819_v38  ;;  %v805_v8 = vadd.f32 %v1903_v54, %v748_v10  ;;  %v806_v18 = vadd.f32 %v1903_v54, %v753_v13 }
 0x1c7   :  { %948 = vst [vmem:[#allocation2 + $0x10] sm:$0xff] %v1193_v32  ;;  %v1194_v44 = vsel %vm901_vm12, 1.0, %v1313_v41  ;;  %v855_v2 = vmul.f32 0.5, %v820_v59  ;;  %vm890_vm7 = vcmp.gt.s32.totalorder %v1910_v35, %v840_v60 }
 0x1c8   :  { %949 = vst [vmem:[#allocation2 + $0x18] sm:$0xff] %v1194_v44  ;;  %vm870_vm14 = vcmp.gt.f32.partialorder %v1815_v0, %v854_v40  ;;  %v821_v1 = vsub.f32 %v805_v8, %v1823_v28  ;;  %v822_v29 = vsub.f32 %v806_v18, %v1917_v63  ;;  %v847_v44 = vadd.s32 120, %v1692_v27 }
 0x1c9   :  { %vm902_vm15 = vmand %vm870_vm14, %vm886_vm11  ;;  %vm871_vm0 = vcmp.gt.f32.partialorder %v1907_v21, %v855_v2  ;;  %v758_v24 = vpop.permute.xlu1 %757  ;;  %v763_v48 = vpop.permute.xlu0 %762  ;;  %v841_v21 = vadd.s32 72, %v1692_v27 }
 0x1ca   :  { %v1195_v15 = vsel %vm902_vm15, 1.0, %v1313_v41  ;;  %vm903_vm2 = vmand %vm871_vm0, %vm887_vm13  ;;  %v856_v49 = vmul.f32 0.5, %v821_v1  ;;  %v857_v0 = vmul.f32 0.5, %v822_v29  ;;  %v807_v57 = vadd.f32 %v1903_v54, %v758_v24 }
 0x1cb   :  { %950 = vst [vmem:[#allocation2 + $0x20] sm:$0xff] %v1195_v15  ;;  %v1196_v23 = vsel %vm903_vm2, 1.0, %v1313_v41  ;;  %v808_v46 = vadd.f32 %v1903_v54, %v763_v48  ;;  %vm891_vm9 = vcmp.gt.s32.totalorder %v1910_v35, %v841_v21  ;;  %vm892_vm13 = vcmp.gt.s32.totalorder %v1910_v35, %v842_v12 }
 0x1cc   :  { %951 = vst [vmem:[#allocation2 + $0x28] sm:$0xff] %v1196_v23  ;;  %vm872_vm4 = vcmp.gt.f32.partialorder %v1823_v28, %v856_v49  ;;  %vm873_vm5 = vcmp.gt.f32.partialorder %v1917_v63, %v857_v0  ;;  %v823_v19 = vsub.f32 %v807_v57, %v1829_v55  ;;  %vm893_vm15 = vcmp.gt.s32.totalorder %v1910_v35, %v843_v3 }
 0x1cd   :  { %vm904_vm6 = vmand %vm872_vm4, %vm888_vm1  ;;  %v824_v62 = vsub.f32 %v808_v46, %v1925_v50  ;;  %v768_v7 = vpop.permute.xlu1 %767  ;;  %v773_v45 = vpop.permute.xlu0 %772  ;;  %v2046_v24 = vmov 1.0  }
 0x1ce   :  { %v1197_v31 = vsel %vm904_vm6, 1.0, %v1313_v41  ;;  %vm905_vm8 = vmand %vm873_vm5, %vm889_vm3  ;;  %v858_v33 = vmul.f32 0.5, %v823_v19  ;;  %v809_v28 = vadd.f32 %v1903_v54, %v768_v7  ;;  %v810_v63 = vadd.f32 %v1903_v54, %v773_v45 }
 0x1cf   :  { %952 = vst [vmem:[#allocation2 + $0x30] sm:$0xff] %v1197_v31  ;;  %v1198_v22 = vsel %vm905_vm8, 1.0, %v1313_v41  ;;  %v859_v39 = vmul.f32 0.5, %v824_v62  ;;  %vm894_vm3 = vcmp.gt.s32.totalorder %v1910_v35, %v844_v43 }
 0x1d0   :  { %953 = vst [vmem:[#allocation2 + $0x38] sm:$0xff] %v1198_v22  ;;  %vm874_vm10 = vcmp.gt.f32.partialorder %v1829_v55, %v858_v33  ;;  %v825_v30 = vsub.f32 %v809_v28, %v1839_v6  ;;  %v826_v51 = vsub.f32 %v810_v63, %v1932_v9 }
 0x1d1   :  { %vm906_vm11 = vmand %vm874_vm10, %vm890_vm7  ;;  %vm875_vm12 = vcmp.gt.f32.partialorder %v1925_v50, %v859_v39  ;;  %v778_v16 = vpop.permute.xlu1 %777  ;;  %v783_v25 = vpop.permute.xlu0 %782  ;;  %v845_v50 = vadd.s32 104, %v1692_v27  ;;  %vm896_vm10 = vcmp.gt.s32.totalorder %v1910_v35, %v846_v11 }
 0x1d2   :  { %v1199_v20 = vsel %vm906_vm11, 1.0, %v1313_v41  ;;  %vm907_vm14 = vmand %vm875_vm12, %vm891_vm9  ;;  %v860_v14 = vmul.f32 0.5, %v825_v30  ;;  %v861_v55 = vmul.f32 0.5, %v826_v51  ;;  %v811_v53 = vadd.f32 %v1903_v54, %v778_v16 }
 0x1d3   :  { %954 = vst [vmem:[#allocation2 + $0x40] sm:$0xff] %v1199_v20  ;;  %v1200_v61 = vsel %vm907_vm14, 1.0, %v1313_v41  ;;  %v812_v56 = vadd.f32 %v1903_v54, %v783_v25  ;;  %vm895_vm5 = vcmp.gt.s32.totalorder %v1910_v35, %v845_v50  ;;  %vm897_vm11 = vcmp.gt.s32.totalorder %v1910_v35, %v847_v44 }
 0x1d4   :  { %955 = vst [vmem:[#allocation2 + $0x48] sm:$0xff] %v1200_v61  ;;  %vm876_vm0 = vcmp.gt.f32.partialorder %v1839_v6, %v860_v14  ;;  %vm877_vm1 = vcmp.gt.f32.partialorder %v1932_v9, %v861_v55  ;;  %v827_v38 = vsub.f32 %v811_v53, %v1850_v58 }
 0x1d5   :  { %vm908_vm2 = vmand %vm876_vm0, %vm892_vm13  ;;  %v828_v59 = vsub.f32 %v812_v56, %v1937_v37  ;;  %v788_v10 = vpop.permute.xlu1 %787  ;;  %v793_v13 = vpop.permute.xlu0 %792 }
 0x1d6   :  { %v1201_v32 = vsel %vm908_vm2, 1.0, %v1313_v41  ;;  %vm909_vm4 = vmand %vm877_vm1, %vm893_vm15  ;;  %v862_v40 = vmul.f32 0.5, %v827_v38  ;;  %v813_v6 = vadd.f32 %v1903_v54, %v788_v10  ;;  %v814_v9 = vadd.f32 %v1903_v54, %v793_v13 }
 0x1d7   :  { %956 = vst [vmem:[#allocation2 + $0x50] sm:$0xff] %v1201_v32  ;;  %v1202_v8 = vsel %vm909_vm4, 1.0, %v1313_v41  ;;  %v863_v18 = vmul.f32 0.5, %v828_v59 }
 0x1d8   :  { %957 = vst [vmem:[#allocation2 + $0x58] sm:$0xff] %v1202_v8  ;;  %vm878_vm6 = vcmp.gt.f32.partialorder %v1850_v58, %v862_v40  ;;  %v829_v2 = vsub.f32 %v813_v6, %v1858_v36  ;;  %v830_v5 = vsub.f32 %v814_v9, %v1939_v47 }
 0x1d9   :  { %vm910_vm7 = vmand %vm878_vm6, %vm894_vm3  ;;  %vm879_vm8 = vcmp.gt.f32.partialorder %v1937_v37, %v863_v18 }
 0x1da   :  { %v1203_v54 = vsel %vm910_vm7, 1.0, %v1313_v41  ;;  %vm911_vm9 = vmand %vm879_vm8, %vm895_vm5  ;;  %v864_v1 = vmul.f32 0.5, %v829_v2  ;;  %v865_v29 = vmul.f32 0.5, %v830_v5 }
 0x1db   :  { %958 = vst [vmem:[#allocation2 + $0x60] sm:$0xff] %v1203_v54  ;;  %v1204_v60 = vsel %vm911_vm9, 1.0, %v1313_v41 }
 0x1dc   :  { %959 = vst [vmem:[#allocation2 + $0x68] sm:$0xff] %v1204_v60  ;;  %vm880_vm12 = vcmp.gt.f32.partialorder %v1858_v36, %v864_v1  ;;  %vm881_vm13 = vcmp.gt.f32.partialorder %v1939_v47, %v865_v29  ;;  %1186 = sbr.rel (%p1207_p0) target bundleno = 2172 (0x87c), region = 30 }
 0x1dd   :  { %vm912_vm14 = vmand %vm880_vm12, %vm896_vm10 }
 0x1de   :  { %v1205_v58 = vsel %vm912_vm14, 1.0, %v1313_v41  ;;  %vm913_vm15 = vmand %vm881_vm13, %vm897_vm11 }
 0x1df   :  { %960 = vst [vmem:[#allocation2 + $0x70] sm:$0xff] %v1205_v58  ;;  %v1206_v37 = vsel %vm913_vm15, 1.0, %v1313_v41 }
 0x1e0   :  { %961 = vst [vmem:[#allocation2 + $0x78] sm:$0xff] %v1206_v37 }
 0x1e1   :  { %v2048_v48 = vmov 1.0  }
 0x1e2 LB: > { %s2057_s22 = sshll.u32 %s1303_s21, 3  ;;  %vm976_vm0 = vcmask 1040384   ;;  %s966_s21 = sadd.s32 1, %s1303_s21   ;;  %s1303_s21 = sphi %s2050_s21, %s966_s21   ;;  %v1299_v48 = vphi %v2048_v48, %v2129_v48  }
 0x1e3   : > { %v973_v36 = vstv %s2057_s22  ;;  %s971_s23 = scalar_lea.vmem [#allocation2], %s2057_s22  ;;  %s991_s24 = sadd.s32 1, %s2057_s22 }
 0x1e4   : > { %vm974_vm1 = vcmp.eq.s32.totalorder %v1910_v35, %v973_v36  ;;  %v992_v45 = vstv %s991_s24  ;;  %s1012_s27 = sadd.s32 2, %s2057_s22  ;;  %s1033_s29 = sadd.s32 3, %s2057_s22 }
 0x1e5   : > { %v975_v47 = vsel %vm974_vm1, %v1299_v48, 0.0  ;;  %vm993_vm2 = vcmp.eq.s32.totalorder %v1910_v35, %v992_v45  ;;  %v1013_v55 = vstv %s1012_s27  ;;  %v1034_v18 = vstv %s1033_s29  ;;  %s1054_s4 = sadd.s32 4, %s2057_s22  ;;  %s1075_s6 = sadd.s32 5, %s2057_s22 }
 0x1e6   : > { %v977_v15 = vsel %vm976_vm0, %v975_v47, 0.0  ;;  %vm1014_vm3 = vcmp.eq.s32.totalorder %v1910_v35, %v1013_v55  ;;  %vm1035_vm4 = vcmp.eq.s32.totalorder %v1910_v35, %v1034_v18  ;;  %s1096_s8 = sadd.s32 6, %s2057_s22  ;;  %s1117_s10 = sadd.s32 7, %s2057_s22 }
 0x1e7   : > { %978 = vadd.xlane.f32.xlu0 %v977_v15  ;;  %v2063_v62 = vld [vmem:[%s971_s23] sm:$0xff]  ;;  %p965_p1 = scmp.ge.s32.totalorder %s966_s21, %s2124_s0 }
 0x270   : > { %v979_v49 = vpop.xlane.xlu0 %978 }
 0x271   : > { %v980_v0 = vrot.slane %v979_v49, 4 }
 0x273   : > { %v981_v57 = vadd.f32 %v980_v0, %v979_v49  ;;  %v1055_v49 = vstv %s1054_s4 }
 0x274   : > { %vm1056_vm5 = vcmp.eq.s32.totalorder %v1910_v35, %v1055_v49 }
 0x275   : > { %v982_v23 = vrot.slane %v981_v57, 2 }
 0x277   : > { %v983_v21 = vadd.f32 %v982_v23, %v981_v57 }
 0x279   : > { %v984_v46 = vrot.slane %v983_v21, 1 }
 0x27b   : > { %v985_v19 = vadd.f32 %v984_v46, %v983_v21 }
 0x27d   : > { %1210 = vpush %v985_v19 }
 0x2ae   : > { %s1211_s25 = spop %1210 }
 0x2af   : > { %v987_v12 = vstv %s1211_s25 }
 0x2b0   : > { %v988_v7 = vmul.f32 %v987_v12, %v2063_v62 }
 0x2b2   : > { %v989_v31 = vsub.f32 1.0, %v988_v7 }
 0x2b4   : > { %v990_v33 = vmul.f32 %v1299_v48, %v989_v31 }
 0x2b6   : > { %v994_v28 = vsel %vm993_vm2, %v990_v33, 0.0 }
 0x2b7   : > { %v995_v63 = vsel %vm976_vm0, %v994_v28, 0.0 }
 0x2b8   : > { %996 = vadd.xlane.f32.xlu0 %v995_v63 }
 0x341   : > { %v997_v22 = vpop.xlane.xlu0 %996 }
 0x342   : > { %v998_v39 = vrot.slane %v997_v22, 4 }
 0x344   : > { %v999_v3 = vadd.f32 %v998_v39, %v997_v22  ;;  %v1076_v39 = vstv %s1075_s6 }
 0x345   : > { %vm1077_vm6 = vcmp.eq.s32.totalorder %v1910_v35, %v1076_v39 }
 0x346   : > { %v1000_v30 = vrot.slane %v999_v3, 2 }
 0x348   : > { %v1001_v51 = vadd.f32 %v1000_v30, %v999_v3 }
 0x34a   : > { %v1002_v43 = vrot.slane %v1001_v51, 1 }
 0x34c   : > { %v1003_v16 = vadd.f32 %v1002_v43, %v1001_v51 }
 0x34e   : > { %1212 = vpush %v1003_v16 }
 0x37f   : > { %s1213_s26 = spop %1212 }
 0x380   : > { %v1005_v25 = vstv %s1213_s26 }
 0x381   : > { %v1006_v20 = vmul.f32 %v1005_v25, %v2063_v62 }
 0x383   : > { %v1007_v14 = vsub.f32 1.0, %v1006_v20 }
 0x385   : > { %v1009_v53 = vrot.slane %v1007_v14, 1 }
 0x387   : > { %v1011_v61 = vmul.f32 %v1009_v53, %v990_v33 }
 0x389   : > { %v1015_v50 = vsel %vm1014_vm3, %v1011_v61, 0.0 }
 0x38a   : > { %v1016_v56 = vsel %vm976_vm0, %v1015_v50, 0.0 }
 0x38b   : > { %1017 = vadd.xlane.f32.xlu1 %v1016_v56 }
 0x414   : > { %v1018_v38 = vpop.xlane.xlu1 %1017 }
 0x415   : > { %v1019_v59 = vrot.slane %v1018_v38, 4 }
 0x417   : > { %v1020_v11 = vadd.f32 %v1019_v59, %v1018_v38  ;;  %v1097_v59 = vstv %s1096_s8 }
 0x418   : > { %vm1098_vm7 = vcmp.eq.s32.totalorder %v1910_v35, %v1097_v59 }
 0x419   : > { %v1021_v10 = vrot.slane %v1020_v11, 2 }
 0x41b   : > { %v1022_v13 = vadd.f32 %v1021_v10, %v1020_v11 }
 0x41d   : > { %v1023_v32 = vrot.slane %v1022_v13, 1 }
 0x41f   : > { %v1024_v40 = vadd.f32 %v1023_v32, %v1022_v13 }
 0x421   : > { %1214 = vpush %v1024_v40 }
 0x452   : > { %s1215_s28 = spop %1214 }
 0x453   : > { %v1026_v6 = vstv %s1215_s28 }
 0x454   : > { %v1027_v9 = vmul.f32 %v1026_v6, %v2063_v62 }
 0x456   : > { %v1028_v8 = vsub.f32 1.0, %v1027_v9 }
 0x458   : > { %v1030_v44 = vrot.slane %v1028_v8, 2 }
 0x45a   : > { %v1032_v2 = vmul.f32 %v1030_v44, %v1011_v61 }
 0x45c   : > { %v1036_v5 = vsel %vm1035_vm4, %v1032_v2, 0.0 }
 0x45d   : > { %v1037_v54 = vsel %vm976_vm0, %v1036_v5, 0.0 }
 0x45e   : > { %1038 = vadd.xlane.f32.xlu1 %v1037_v54 }
 0x4e7   : > { %v1039_v1 = vpop.xlane.xlu1 %1038 }
 0x4e8   : > { %v1040_v29 = vrot.slane %v1039_v1, 4 }
 0x4ea   : > { %v1041_v60 = vadd.f32 %v1040_v29, %v1039_v1  ;;  %v1118_v29 = vstv %s1117_s10 }
 0x4eb   : > { %vm1119_vm8 = vcmp.eq.s32.totalorder %v1910_v35, %v1118_v29 }
 0x4ec   : > { %v1042_v58 = vrot.slane %v1041_v60, 2 }
 0x4ee   : > { %v1043_v37 = vadd.f32 %v1042_v58, %v1041_v60 }
 0x4f0   : > { %v1044_v24 = vrot.slane %v1043_v37, 1 }
 0x4f2   : > { %v1045_v48 = vadd.f32 %v1044_v24, %v1043_v37 }
 0x4f4   : > { %1216 = vpush %v1045_v48 }
 0x525   : > { %s1217_s30 = spop %1216 }
 0x526   : > { %v1047_v36 = vstv %s1217_s30 }
 0x527   : > { %v1048_v47 = vmul.f32 %v1047_v36, %v2063_v62 }
 0x529   : > { %v1049_v15 = vsub.f32 1.0, %v1048_v47 }
 0x52b   : > { %v1051_v0 = vrot.slane %v1049_v15, 3 }
 0x52d   : > { %v1053_v57 = vmul.f32 %v1051_v0, %v1032_v2 }
 0x52f   : > { %v1057_v23 = vsel %vm1056_vm5, %v1053_v57, 0.0 }
 0x530   : > { %v1058_v21 = vsel %vm976_vm0, %v1057_v23, 0.0 }
 0x531   : > { %1059 = vadd.xlane.f32.xlu0 %v1058_v21 }
 0x5ba   : > { %v1060_v46 = vpop.xlane.xlu0 %1059 }
 0x5bb   : > { %v1061_v19 = vrot.slane %v1060_v46, 4 }
 0x5bd   : > { %v1062_v12 = vadd.f32 %v1061_v19, %v1060_v46 }
 0x5bf   : > { %v1063_v7 = vrot.slane %v1062_v12, 2 }
 0x5c1   : > { %v1064_v45 = vadd.f32 %v1063_v7, %v1062_v12 }
 0x5c3   : > { %v1065_v31 = vrot.slane %v1064_v45, 1 }
 0x5c5   : > { %v1066_v33 = vadd.f32 %v1065_v31, %v1064_v45 }
 0x5c7   : > { %1218 = vpush %v1066_v33 }
 0x5f8   : > { %s1219_s5 = spop %1218 }
 0x5f9   : > { %v1068_v28 = vstv %s1219_s5 }
 0x5fa   : > { %v1069_v63 = vmul.f32 %v1068_v28, %v2063_v62 }
 0x5fc   : > { %v1070_v22 = vsub.f32 1.0, %v1069_v63 }
 0x5fe   : > { %v1072_v3 = vrot.slane %v1070_v22, 4 }
 0x600   : > { %v1074_v30 = vmul.f32 %v1072_v3, %v1053_v57 }
 0x602   : > { %v1078_v51 = vsel %vm1077_vm6, %v1074_v30, 0.0 }
 0x603   : > { %v1079_v43 = vsel %vm976_vm0, %v1078_v51, 0.0 }
 0x604   : > { %1080 = vadd.xlane.f32.xlu1 %v1079_v43 }
 0x68d   : > { %v1081_v16 = vpop.xlane.xlu1 %1080 }
 0x68e   : > { %v1082_v25 = vrot.slane %v1081_v16, 4 }
 0x690   : > { %v1083_v20 = vadd.f32 %v1082_v25, %v1081_v16 }
 0x692   : > { %v1084_v14 = vrot.slane %v1083_v20, 2 }
 0x694   : > { %v1085_v55 = vadd.f32 %v1084_v14, %v1083_v20 }
 0x696   : > { %v1086_v53 = vrot.slane %v1085_v55, 1 }
 0x698   : > { %v1087_v61 = vadd.f32 %v1086_v53, %v1085_v55 }
 0x69a   : > { %1220 = vpush %v1087_v61 }
 0x6cb   : > { %s1221_s7 = spop %1220 }
 0x6cc   : > { %v1089_v50 = vstv %s1221_s7 }
 0x6cd   : > { %v1090_v56 = vmul.f32 %v1089_v50, %v2063_v62 }
 0x6cf   : > { %v1091_v38 = vsub.f32 1.0, %v1090_v56 }
 0x6d1   : > { %v1093_v11 = vrot.slane %v1091_v38, 5 }
 0x6d3   : > { %v1095_v10 = vmul.f32 %v1093_v11, %v1074_v30 }
 0x6d5   : > { %v1099_v13 = vsel %vm1098_vm7, %v1095_v10, 0.0 }
 0x6d6   : > { %v1100_v32 = vsel %vm976_vm0, %v1099_v13, 0.0 }
 0x6d7   : > { %1101 = vadd.xlane.f32.xlu0 %v1100_v32 }
 0x760   : > { %v1102_v40 = vpop.xlane.xlu0 %1101 }
 0x761   : > { %v1103_v6 = vrot.slane %v1102_v40, 4 }
 0x763   : > { %v1104_v9 = vadd.f32 %v1103_v6, %v1102_v40 }
 0x765   : > { %v1105_v8 = vrot.slane %v1104_v9, 2 }
 0x767   : > { %v1106_v18 = vadd.f32 %v1105_v8, %v1104_v9 }
 0x769   : > { %v1107_v44 = vrot.slane %v1106_v18, 1 }
 0x76b   : > { %v1108_v2 = vadd.f32 %v1107_v44, %v1106_v18 }
 0x76d   : > { %1222 = vpush %v1108_v2 }
 0x79e   : > { %s1223_s9 = spop %1222 }
 0x79f   : > { %v1110_v5 = vstv %s1223_s9 }
 0x7a0   : > { %v1111_v54 = vmul.f32 %v1110_v5, %v2063_v62 }
 0x7a2   : > { %v1112_v1 = vsub.f32 1.0, %v1111_v54 }
 0x7a4   : > { %v1114_v60 = vrot.slane %v1112_v1, 6 }
 0x7a6   : > { %v1116_v58 = vmul.f32 %v1114_v60, %v1095_v10 }
 0x7a8   : > { %v1120_v37 = vsel %vm1119_vm8, %v1116_v58, 0.0 }
 0x7a9   : > { %v1121_v24 = vsel %vm976_vm0, %v1120_v37, 0.0 }
 0x7aa   : > { %1122 = vadd.xlane.f32.xlu1 %v1121_v24 }
 0x833   : > { %v1123_v48 = vpop.xlane.xlu1 %1122 }
 0x834   : > { %v1124_v36 = vrot.slane %v1123_v48, 4 }
 0x836   : > { %v1125_v47 = vadd.f32 %v1124_v36, %v1123_v48 }
 0x838   : > { %v1126_v15 = vrot.slane %v1125_v47, 2 }
 0x83a   : > { %v1127_v49 = vadd.f32 %v1126_v15, %v1125_v47 }
 0x83c   : > { %v1128_v0 = vrot.slane %v1127_v49, 1 }
 0x83e   : > { %v1129_v57 = vadd.f32 %v1128_v0, %v1127_v49 }
 0x840   : > { %1224 = vpush %v1129_v57 }
 0x871   : > { %s1225_s11 = spop %1224 }
 0x872   : > { %v1131_v23 = vstv %s1225_s11 }
 0x873   : > { %v1132_v21 = vmul.f32 %v1131_v23, %v2063_v62 }
 0x875   : > { %v1133_v46 = vsub.f32 1.0, %v1132_v21 }
 0x877   : > { %v1135_v19 = vrot.slane %v1133_v46, 7  ;;  %968 = sbr.rel (!%p965_p1) target bundleno = 482 (0x1e2), region = 36 }
 0x879   : > { %v1137_v12 = vmul.f32 %v1135_v19, %v1116_v58  }
 0x87b   : > { %v2129_v48 = vmov %v1137_v12  ;;  %v2130_v24 = vmov (%p965_p1), %v1137_v12 }
 0x87c PF:  { %vm1139_vm9 = vcmp.ge.f32.partialorder %v1679_v17, 0.25  ;;  %v2131_v62 = vmov 0   ;;  %vm1138_vm10 = vcmp.gt.f32.partialorder %v1307_v24, 0.0  ;;  %v1153_v31 = vsub.s32 4, %v1692_v27  ;;  %s1314_s0 = smov [#allocation5]   ;;  %v1307_v24 = vphi %v2046_v24, %v2130_v24  }
 0x87d   :  { %v1140_v7 = vsel %vm1139_vm9, 1, %v2131_v62  ;;  %vm1155_vm13 = vcmp.eq.s32.totalorder %v1692_v27, 5  ;;  %vm1150_vm14 = vcmp.eq.s32.totalorder %v1692_v27, 4  ;;  %vm1149_vm15 = vcmp.eq.s32.totalorder %v1692_v27, 3  ;;  %s1173_s14 = sshll.u32 %s1314_s0, 4  ;;  %s1174_s14 = int_to_ptr.vmem [resolvable:$true] %s1173_s14 }
 0x87e   :  { %v1141_v45 = vrot.slane %v1140_v7, 4  ;;  %v1154_v28 = vrot.slane %v1679_v17, %v1153_v31  ;;  %vm1148_vm0 = vcmp.eq.s32.totalorder %v1692_v27, 2  ;;  %vm1147_vm1 = vcmp.eq.s32.totalorder %v1692_v27, 1  ;;  %s1263_s15 = scalar_lea.vmem %s1174_s14, 128  ;;  %p1268_p3 = scmp.lt.s32.totalorder %s1174_s14, %s1174_s14 }
 0x87f   :  { %vm1146_vm2 = vcmp.eq.s32.totalorder %v1692_v27, 0  ;;  %p1264_p2 = scmp.ne.s32.totalorder %s1174_s14, %s1263_s15  ;;  %p1269_p4 = scmp.lt.s32.totalorder %s1263_s15, %s1263_s15 }
 0x880   :  { %vm1142_vm11 = vcmp.ne.s32.totalorder %v1141_v45, 0 }
 0x881   :  { %vm1143_vm12 = vmand %vm1138_vm10, %vm1142_vm11  ;;  %p1270_p5 = por %p1269_p4, %p1268_p3 }
 0x882   :  { %v1209_v33 = vsel %vm1143_vm12, 1.0, %v1313_v41 }
 0x883   :  { %v1159_v35 = vrot.slane %v1209_v33, %v1773_v26  ;;  %p1271_p6 = pnand %p1270_p5, %p1264_p2 }
 0x885   :  { %v1160_v63 = vsel %vm1155_vm13, %v1159_v35, 0.0 }
 0x886   :  { %v1161_v22 = vsel %vm1150_vm14, %v1154_v28, %v1160_v63 }
 0x887   :  { %v1162_v17 = vsel %vm1149_vm15, %v1713_v4, %v1161_v22 }
 0x888   :  { %v1163_v41 = vsel %vm1148_vm0, %v1785_v52, %v1162_v17 }
 0x889   :  { %v1164_v39 = vsel %vm1147_vm1, %v1708_v42, %v1163_v41 }
 0x88a   :  { %v1165_v26 = vsel %vm1146_vm2, %v1781_v34, %v1164_v39 }
 0x88b   :  { %1166 = vst [vmem:[#allocation5] sm:$0xff] %v1165_v26 }
 0x88c   :  { %1274 = shalt.err (!%p1271_p6)
}
 0x88d   :  { %1176 = dma.vmem_to_hbm [thread:$0]  %s1174_s14, 128, %s2127_s3, [#allocation6]  }
 0x88e   :  { %1295 = dma.done.wait [#allocation6], 128  }
 0x88f   :  { %1296 = vsyncadd [#allocation6], 4294967168 }
 0x890   :  { %1180 = vsyncpa [#allocation6], 1 }

</bundles_post_ra>
